<compile_context>
chip_gen: v6e
topology: v6e:2x2x1
jax: 0.10.0
libtpu: 0.0.40
codegen_flags: <defaults>
</compile_context>

<pallas_src>
import functools

import jax
import jax.numpy as jnp
from jax import lax
from jax.experimental import pallas as pl
from jax.experimental.pallas import tpu as pltpu


# ---------------------------------------------------------------------------
# Layout helpers (plain JAX glue: cheap zero padding + flattening)
# ---------------------------------------------------------------------------

def _pad_ext_flat(x):
    """(B, C, H, W) -> (B, C, Ne) padded-flat layout with guard margins.

    The 1-pixel zero-padded image (Hp=H+2, Wp=W+2) is flattened row-major and
    G = Wp+1 extra zeros are added on both ends so every 3x3 tap offset in
    [-(Wp+1), +(Wp+1)] can be read as a static, in-bounds slice of length Np.
    """
    B, C, H, W = x.shape
    Hp, Wp = H + 2, W + 2
    G = Wp + 1
    xp = jnp.pad(x, ((0, 0), (0, 0), (1, 1), (1, 1))).reshape(B, C, Hp * Wp)
    return jnp.pad(xp, ((0, 0), (0, 0), (G, G)))


def _interior_mask_ext(H, W):
    """(1, Ne) f32 mask: 1 at real image pixels, 0 at halo / guard positions."""
    Hp, Wp = H + 2, W + 2
    G = Wp + 1
    m = jnp.zeros((Hp, Wp), jnp.float32)
    m = m.at[1:H + 1, 1:W + 1].set(1.0)
    m = m.reshape(1, Hp * Wp)
    return jnp.pad(m, ((0, 0), (G, G)))


# ---------------------------------------------------------------------------
# Kernel A: fused kv = dwconv3x3(conv1x1(y))      -> k, v   (zero-halo layout)
# ---------------------------------------------------------------------------

def _kv_fused_kernel(y_ref, w1_ref, b1_ref, wd_ref, bd_ref, mask_ref,
                     k_ref, v_ref, kv1_ref, *, H, W, dim_k):
    Hp, Wp = H + 2, W + 2
    Np = Hp * Wp
    G = Wp + 1
    offs = [(dy - 1) * Wp + (dx - 1) for dy in range(3) for dx in range(3)]

    # 1x1 conv over the whole extended slab (guards/halos stay 0: zero input, masked bias).
    y = y_ref[0].astype(jnp.float32)                                     # (Ck, Ne)
    w1 = w1_ref[...].astype(jnp.float32)                                 # (2Ck, Ck)
    kv1 = jnp.dot(w1, y, preferred_element_type=jnp.float32)
    kv1 = kv1 + b1_ref[...].astype(jnp.float32) * mask_ref[...].astype(jnp.float32)
    kv1_ref[...] = kv1                                                   # park in VMEM

    # Depthwise 3x3: unrolled 9-tap multiply-accumulate on shifted VMEM slices.
    s0 = G + offs[0]
    acc = kv1_ref[:, s0:s0 + Np] * wd_ref[:, 0:1].astype(jnp.float32)
    for t in range(1, 9):
        s = G + offs[t]
        acc = acc + kv1_ref[:, s:s + Np] * wd_ref[:, t:t + 1].astype(jnp.float32)

    mask_c = mask_ref[:, G:G + Np].astype(jnp.float32)                   # (1, Np)
    kv = (acc + bd_ref[...].astype(jnp.float32)) * mask_c                # zero halos
    k_ref[0] = kv[:dim_k].astype(k_ref.dtype)
    v_ref[0] = kv[dim_k:].astype(v_ref.dtype)


# ---------------------------------------------------------------------------
# Kernel B: fused q = conv3x3(x), multi-head channel attention, 1x1 projection
# ---------------------------------------------------------------------------

def _q_attn_proj_kernel(t_ref, x_ref, k_ref, v_ref, qw_ref, qb_ref, mask_ref,
                        pw_ref, pb_ref, o_ref, ao_ref,
                        *, H, W, num_heads, dim_q, dim_k):
    Hp, Wp = H + 2, W + 2
    Np = Hp * Wp
    G = Wp + 1
    offs = [(dy - 1) * Wp + (dx - 1) for dy in range(3) for dx in range(3)]
    cq = dim_q // num_heads
    ck = dim_k // num_heads
    mask_c = mask_ref[:, G:G + Np].astype(jnp.float32)                   # (1, Np)

    # --- q = 3x3 conv(x): 9 shifted-slice matmuls accumulated in f32 ---
    s0 = G + offs[0]
    q = jnp.dot(qw_ref[0].astype(jnp.float32),
                x_ref[0, :, s0:s0 + Np].astype(jnp.float32),
                preferred_element_type=jnp.float32)
    for t in range(1, 9):
        s = G + offs[t]
        q = q + jnp.dot(qw_ref[t].astype(jnp.float32),
                        x_ref[0, :, s:s + Np].astype(jnp.float32),
                        preferred_element_type=jnp.float32)
    q = (q + qb_ref[...].astype(jnp.float32)) * mask_c                   # (Cq, Np), zero halos

    # --- per-head L2-normalised cross-channel attention (all heads this step) ---
    eps2 = 1e-24        # (torch F.normalize eps = 1e-12) squared
    for h in range(num_heads):
        qh = q[h * cq:(h + 1) * cq]                                      # (cq, Np)
        kh = k_ref[0, h * ck:(h + 1) * ck, :].astype(jnp.float32)        # (ck, Np)
        vh = v_ref[0, h * ck:(h + 1) * ck, :].astype(jnp.float32)        # (ck, Np)
        # rsqrt on (c,1) sums + multiply instead of dividing the (c,N) slabs.
        q_inv = lax.rsqrt(jnp.maximum(jnp.sum(qh * qh, axis=-1, keepdims=True), eps2))
        k_inv = lax.rsqrt(jnp.maximum(jnp.sum(kh * kh, axis=-1, keepdims=True), eps2))
        qn = qh * q_inv
        kn = kh * k_inv
        logits = lax.dot_general(qn, kn, (((1,), (1,)), ((), ())),
                                 preferred_element_type=jnp.float32)      # (cq, ck)
        logits = logits * t_ref[h]                                        # SMEM scalar temperature
        logits = logits - jnp.max(logits, axis=-1, keepdims=True)
        p = jnp.exp(logits)
        p = p * (1.0 / jnp.sum(p, axis=-1, keepdims=True))
        ao_ref[h * cq:(h + 1) * cq, :] = jnp.dot(p, vh, preferred_element_type=jnp.float32)

    # --- fused 1x1 projection: attention output never leaves VMEM ---
    out = jnp.dot(pw_ref[...].astype(jnp.float32), ao_ref[...],
                  preferred_element_type=jnp.float32) + pb_ref[...].astype(jnp.float32)
    o_ref[0] = out.astype(o_ref.dtype)


# ---------------------------------------------------------------------------
# Forward wrapper
# ---------------------------------------------------------------------------

def cross_channel_attention_forward(x, y, params, num_heads,
                                    *, vmem_limit_bytes=48 * 1024 * 1024):
    """Pallas implementation of CrossChannelAttention.forward(x, y)."""
    B, dim_q, H, W = x.shape
    dim_k = y.shape[1]
    C2 = 2 * dim_k
    Hp, Wp = H + 2, W + 2
    Np = Hp * Wp
    G = Wp + 1
    Ne = Np + 2 * G
    dtype = x.dtype

    x_ext = _pad_ext_flat(x)                                             # (B, Cq, Ne)
    y_ext = _pad_ext_flat(y)                                             # (B, Ck, Ne)
    mask = _interior_mask_ext(H, W)                                      # (1, Ne)

    w1 = params["kv_w"]                                                  # (2Ck, Ck)
    b1 = params["kv_b"].reshape(C2, 1)
    wd9 = params["kv_dw_w"].reshape(C2, 9)                               # tap index = dy*3+dx
    bd = params["kv_dw_b"].reshape(C2, 1)
    qw9 = jnp.transpose(params["q_w"].reshape(dim_q, dim_q, 9), (2, 0, 1))  # (9, Cq, Cq)
    qb = params["q_b"].reshape(dim_q, 1)
    pw = params["proj_w"]                                                # (Cq, Cq)
    pb = params["proj_b"].reshape(dim_q, 1)
    temp = params["temperature"].reshape(num_heads).astype(jnp.float32)  # (heads,)

    cparams = pltpu.CompilerParams(dimension_semantics=("parallel",),
                                   vmem_limit_bytes=vmem_limit_bytes)

    # ---- Kernel A: y -> k, v ----
    kv_kernel = functools.partial(_kv_fused_kernel, H=H, W=W, dim_k=dim_k)
    k, v = pl.pallas_call(
        kv_kernel,
        out_shape=(jax.ShapeDtypeStruct((B, dim_k, Np), dtype),
                   jax.ShapeDtypeStruct((B, dim_k, Np), dtype)),
        grid=(B,),
        in_specs=[
            pl.BlockSpec((1, dim_k, Ne), lambda b: (b, 0, 0)),           # y_ext
            pl.BlockSpec((C2, dim_k), lambda b: (0, 0)),                 # kv 1x1 weight
            pl.BlockSpec((C2, 1), lambda b: (0, 0)),                     # kv 1x1 bias
            pl.BlockSpec((C2, 9), lambda b: (0, 0)),                     # dw 3x3 weight
            pl.BlockSpec((C2, 1), lambda b: (0, 0)),                     # dw 3x3 bias
            pl.BlockSpec((1, Ne), lambda b: (0, 0)),                     # interior mask
        ],
        out_specs=(pl.BlockSpec((1, dim_k, Np), lambda b: (b, 0, 0)),
                   pl.BlockSpec((1, dim_k, Np), lambda b: (b, 0, 0))),
        scratch_shapes=[pltpu.VMEM((C2, Ne), jnp.float32)],
        compiler_params=cparams,
    )(y_ext, w1, b1, wd9, bd, mask)

    # ---- Kernel B: x, k, v -> project_out(attention) ----
    attn_kernel = functools.partial(_q_attn_proj_kernel, H=H, W=W,
                                    num_heads=num_heads, dim_q=dim_q, dim_k=dim_k)
    out_pad = pl.pallas_call(
        attn_kernel,
        out_shape=jax.ShapeDtypeStruct((B, dim_q, Np), dtype),
        grid=(B,),
        in_specs=[
            pl.BlockSpec(memory_space=pltpu.MemorySpace.SMEM),           # temperature (heads,)
            pl.BlockSpec((1, dim_q, Ne), lambda b: (b, 0, 0)),           # x_ext
            pl.BlockSpec((1, dim_k, Np), lambda b: (b, 0, 0)),           # k
            pl.BlockSpec((1, dim_k, Np), lambda b: (b, 0, 0)),           # v
            pl.BlockSpec((9, dim_q, dim_q), lambda b: (0, 0, 0)),        # q conv taps
            pl.BlockSpec((dim_q, 1), lambda b: (0, 0)),                  # q conv bias
            pl.BlockSpec((1, Ne), lambda b: (0, 0)),                     # interior mask
            pl.BlockSpec((dim_q, dim_q), lambda b: (0, 0)),              # proj weight
            pl.BlockSpec((dim_q, 1), lambda b: (0, 0)),                  # proj bias
        ],
        out_specs=pl.BlockSpec((1, dim_q, Np), lambda b: (b, 0, 0)),
        scratch_shapes=[pltpu.VMEM((dim_q, Np), jnp.float32)],
        compiler_params=cparams,
    )(temp, x_ext, k, v, qw9, qb, mask, pw, pb)

    # Extract the interior (drop halos) and restore NCHW.
    return out_pad.reshape(B, dim_q, Hp, Wp)[:, :, 1:H + 1, 1:W + 1]


# ---------------------------------------------------------------------------
# Deterministic parameters + pure-JAX reference
# ---------------------------------------------------------------------------

def init_params(key, dim_q, dim_k, num_heads):
    ks = jax.random.split(key, 8)
    s = 0.1
    return dict(
        temperature=1.0 + 0.25 * jnp.arange(num_heads, dtype=jnp.float32).reshape(num_heads, 1, 1),
        kv_w=s * jax.random.normal(ks[0], (2 * dim_k, dim_k), jnp.float32),
        kv_b=s * jax.random.normal(ks[1], (2 * dim_k,), jnp.float32),
        kv_dw_w=s * jax.random.normal(ks[2], (2 * dim_k, 3, 3), jnp.float32),
        kv_dw_b=s * jax.random.normal(ks[3], (2 * dim_k,), jnp.float32),
        q_w=s * jax.random.normal(ks[4], (dim_q, dim_q, 3, 3), jnp.float32),
        q_b=s * jax.random.normal(ks[5], (dim_q,), jnp.float32),
        proj_w=s * jax.random.normal(ks[6], (dim_q, dim_q), jnp.float32),
        proj_b=s * jax.random.normal(ks[7], (dim_q,), jnp.float32),
    )


def ref_forward(x, y, params, num_heads):
    def conv(inp, w, b, padding, groups=1):
        out = lax.conv_general_dilated(
            inp, w, window_strides=(1, 1), padding=padding,
            dimension_numbers=("NCHW", "OIHW", "NCHW"),
            feature_group_count=groups)
        return out + b[None, :, None, None]

    dim_k = y.shape[1]
    dim_q = x.shape[1]
    kv = conv(y, params["kv_w"].reshape(2 * dim_k, dim_k, 1, 1), params["kv_b"],
              padding=[(0, 0), (0, 0)])
    kv = conv(kv, params["kv_dw_w"].reshape(2 * dim_k, 1, 3, 3), params["kv_dw_b"],
              padding=[(1, 1), (1, 1)], groups=2 * dim_k)
    k, v = kv[:, :dim_k], kv[:, dim_k:]
    q = conv(x, params["q_w"], params["q_b"], padding=[(1, 1), (1, 1)])

    B, _, H, W = x.shape
    N = H * W
    cq, ck = dim_q // num_heads, dim_k // num_heads
    qh = q.reshape(B, num_heads, cq, N)
    kh = k.reshape(B, num_heads, ck, N)
    vh = v.reshape(B, num_heads, ck, N)
    eps = 1e-12
    qh = qh / jnp.maximum(jnp.linalg.norm(qh, axis=-1, keepdims=True), eps)
    kh = kh / jnp.maximum(jnp.linalg.norm(kh, axis=-1, keepdims=True), eps)
    attn = jnp.einsum("bhcn,bhdn->bhcd", qh, kh) * params["temperature"][None]
    attn = jax.nn.softmax(attn, axis=-1)
    out = jnp.einsum("bhcd,bhdn->bhcn", attn, vh).reshape(B, dim_q, H, W)
    out = conv(out, params["proj_w"].reshape(dim_q, dim_q, 1, 1), params["proj_b"],
               padding=[(0, 0), (0, 0)])
    return out


if __name__ == "__main__":
    B, dim_q, dim_k, num_heads, H, W = 2, 16, 16, 2, 16, 16
    key = jax.random.PRNGKey(0)
    kx, ky, kp = jax.random.split(key, 3)
    x = jax.random.normal(kx, (B, dim_q, H, W), jnp.float32)
    y = jax.random.normal(ky, (B, dim_k, H, W), jnp.float32)
    params = init_params(kp, dim_q, dim_k, num_heads)

    fwd = jax.jit(lambda a, bb: cross_channel_attention_forward(a, bb, params, num_heads))
    out = jax.block_until_ready(fwd(x, y))

    ref = ref_forward(x, y, params, num_heads)
    assert out.shape == (B, dim_q, H, W)
    err = float(jnp.max(jnp.abs(out - ref)))
    assert jnp.allclose(out, ref, atol=1e-4, rtol=1e-4), err
    print("KERNEL_OK")
</pallas_src>

<mosaic_0001>
module attributes {stable_mosaic.version = 11 : i64} {
  func.func @_q_attn_proj_kernel(%arg0: i32, %arg1: memref<2xf32, #tpu.memory_space<smem>>, %arg2: memref<1x16x362xf32, #tpu.memory_space<vmem>>, %arg3: memref<1x16x324xf32, #tpu.memory_space<vmem>>, %arg4: memref<1x16x324xf32, #tpu.memory_space<vmem>>, %arg5: memref<9x16x16xf32, #tpu.memory_space<vmem>>, %arg6: memref<16x1xf32, #tpu.memory_space<vmem>>, %arg7: memref<1x362xf32, #tpu.memory_space<vmem>>, %arg8: memref<16x16xf32, #tpu.memory_space<vmem>>, %arg9: memref<16x1xf32, #tpu.memory_space<vmem>>, %arg10: memref<1x16x324xf32, #tpu.memory_space<vmem>>, %arg11: memref<16x324xf32, #tpu.memory_space<vmem>>) attributes {dimension_semantics = [#tpu.dimension_semantics<parallel>], iteration_bounds = array<i64: 2>, scalar_prefetch = 0 : i64, scratch_operands = 1 : i64, tpu.core_type = #tpu.core_type<tc>, window_params = [{transform_indices = @transform_0, window_bounds = array<i64: 2>}, {transform_indices = @transform_1, window_bounds = array<i64: 1, 16, 362>}, {transform_indices = @transform_2, window_bounds = array<i64: 1, 16, 324>}, {transform_indices = @transform_3, window_bounds = array<i64: 1, 16, 324>}, {pipeline_mode = #tpu.pipeline_mode<synchronous>, transform_indices = @transform_4, window_bounds = array<i64: 9, 16, 16>}, {pipeline_mode = #tpu.pipeline_mode<synchronous>, transform_indices = @transform_5, window_bounds = array<i64: 16, 1>}, {pipeline_mode = #tpu.pipeline_mode<synchronous>, transform_indices = @transform_6, window_bounds = array<i64: 1, 362>}, {pipeline_mode = #tpu.pipeline_mode<synchronous>, transform_indices = @transform_7, window_bounds = array<i64: 16, 16>}, {pipeline_mode = #tpu.pipeline_mode<synchronous>, transform_indices = @transform_8, window_bounds = array<i64: 16, 1>}, {transform_indices = @transform_9, window_bounds = array<i64: 1, 16, 324>}]} {
    %c0 = arith.constant 0 : index
    %c19 = arith.constant 19 : index
    %0 = vector.load %arg7[%c0, %c19] : memref<1x362xf32, #tpu.memory_space<vmem>>, vector<1x324xf32>
    %c0_0 = arith.constant 0 : index
    %c0_1 = arith.constant 0 : index
    %c0_2 = arith.constant 0 : index
    %1 = vector.load %arg5[%c0_0, %c0_1, %c0_2] : memref<9x16x16xf32, #tpu.memory_space<vmem>>, vector<1x16x16xf32>
    %2 = vector.shape_cast %1 : vector<1x16x16xf32> to vector<16x16xf32>
    %c0_3 = arith.constant 0 : index
    %c0_4 = arith.constant 0 : index
    %c0_5 = arith.constant 0 : index
    %3 = vector.load %arg2[%c0_3, %c0_4, %c0_5] : memref<1x16x362xf32, #tpu.memory_space<vmem>>, vector<1x16x324xf32>
    %4 = vector.shape_cast %3 : vector<1x16x324xf32> to vector<16x324xf32>
    %cst = arith.constant dense<0.000000e+00> : vector<16x324xf32>
    %5 = tpu.matmul %2, %4, %cst {dimension_numbers = #tpu.dot_dimension_numbers<[1], [0], [0], [1], [0, 0, 1, 1], [], []>} : vector<16x16xf32>, vector<16x324xf32>, vector<16x324xf32> -> vector<16x324xf32>
    %c1 = arith.constant 1 : index
    %c0_6 = arith.constant 0 : index
    %c0_7 = arith.constant 0 : index
    %6 = vector.load %arg5[%c1, %c0_6, %c0_7] : memref<9x16x16xf32, #tpu.memory_space<vmem>>, vector<1x16x16xf32>
    %7 = vector.shape_cast %6 : vector<1x16x16xf32> to vector<16x16xf32>
    %c0_8 = arith.constant 0 : index
    %c0_9 = arith.constant 0 : index
    %c1_10 = arith.constant 1 : index
    %8 = vector.load %arg2[%c0_8, %c0_9, %c1_10] : memref<1x16x362xf32, #tpu.memory_space<vmem>>, vector<1x16x324xf32>
    %9 = vector.shape_cast %8 : vector<1x16x324xf32> to vector<16x324xf32>
    %cst_11 = arith.constant dense<0.000000e+00> : vector<16x324xf32>
    %10 = tpu.matmul %7, %9, %cst_11 {dimension_numbers = #tpu.dot_dimension_numbers<[1], [0], [0], [1], [0, 0, 1, 1], [], []>} : vector<16x16xf32>, vector<16x324xf32>, vector<16x324xf32> -> vector<16x324xf32>
    %11 = arith.addf %5, %10 : vector<16x324xf32>
    %c2 = arith.constant 2 : index
    %c0_12 = arith.constant 0 : index
    %c0_13 = arith.constant 0 : index
    %12 = vector.load %arg5[%c2, %c0_12, %c0_13] : memref<9x16x16xf32, #tpu.memory_space<vmem>>, vector<1x16x16xf32>
    %13 = vector.shape_cast %12 : vector<1x16x16xf32> to vector<16x16xf32>
    %c0_14 = arith.constant 0 : index
    %c0_15 = arith.constant 0 : index
    %c2_16 = arith.constant 2 : index
    %14 = vector.load %arg2[%c0_14, %c0_15, %c2_16] : memref<1x16x362xf32, #tpu.memory_space<vmem>>, vector<1x16x324xf32>
    %15 = vector.shape_cast %14 : vector<1x16x324xf32> to vector<16x324xf32>
    %cst_17 = arith.constant dense<0.000000e+00> : vector<16x324xf32>
    %16 = tpu.matmul %13, %15, %cst_17 {dimension_numbers = #tpu.dot_dimension_numbers<[1], [0], [0], [1], [0, 0, 1, 1], [], []>} : vector<16x16xf32>, vector<16x324xf32>, vector<16x324xf32> -> vector<16x324xf32>
    %17 = arith.addf %11, %16 : vector<16x324xf32>
    %c3 = arith.constant 3 : index
    %c0_18 = arith.constant 0 : index
    %c0_19 = arith.constant 0 : index
    %18 = vector.load %arg5[%c3, %c0_18, %c0_19] : memref<9x16x16xf32, #tpu.memory_space<vmem>>, vector<1x16x16xf32>
    %19 = vector.shape_cast %18 : vector<1x16x16xf32> to vector<16x16xf32>
    %c0_20 = arith.constant 0 : index
    %c0_21 = arith.constant 0 : index
    %c18 = arith.constant 18 : index
    %20 = vector.load %arg2[%c0_20, %c0_21, %c18] : memref<1x16x362xf32, #tpu.memory_space<vmem>>, vector<1x16x324xf32>
    %21 = vector.shape_cast %20 : vector<1x16x324xf32> to vector<16x324xf32>
    %cst_22 = arith.constant dense<0.000000e+00> : vector<16x324xf32>
    %22 = tpu.matmul %19, %21, %cst_22 {dimension_numbers = #tpu.dot_dimension_numbers<[1], [0], [0], [1], [0, 0, 1, 1], [], []>} : vector<16x16xf32>, vector<16x324xf32>, vector<16x324xf32> -> vector<16x324xf32>
    %23 = arith.addf %17, %22 : vector<16x324xf32>
    %c4 = arith.constant 4 : index
    %c0_23 = arith.constant 0 : index
    %c0_24 = arith.constant 0 : index
    %24 = vector.load %arg5[%c4, %c0_23, %c0_24] : memref<9x16x16xf32, #tpu.memory_space<vmem>>, vector<1x16x16xf32>
    %25 = vector.shape_cast %24 : vector<1x16x16xf32> to vector<16x16xf32>
    %c0_25 = arith.constant 0 : index
    %c0_26 = arith.constant 0 : index
    %c19_27 = arith.constant 19 : index
    %26 = vector.load %arg2[%c0_25, %c0_26, %c19_27] : memref<1x16x362xf32, #tpu.memory_space<vmem>>, vector<1x16x324xf32>
    %27 = vector.shape_cast %26 : vector<1x16x324xf32> to vector<16x324xf32>
    %cst_28 = arith.constant dense<0.000000e+00> : vector<16x324xf32>
    %28 = tpu.matmul %25, %27, %cst_28 {dimension_numbers = #tpu.dot_dimension_numbers<[1], [0], [0], [1], [0, 0, 1, 1], [], []>} : vector<16x16xf32>, vector<16x324xf32>, vector<16x324xf32> -> vector<16x324xf32>
    %29 = arith.addf %23, %28 : vector<16x324xf32>
    %c5 = arith.constant 5 : index
    %c0_29 = arith.constant 0 : index
    %c0_30 = arith.constant 0 : index
    %30 = vector.load %arg5[%c5, %c0_29, %c0_30] : memref<9x16x16xf32, #tpu.memory_space<vmem>>, vector<1x16x16xf32>
    %31 = vector.shape_cast %30 : vector<1x16x16xf32> to vector<16x16xf32>
    %c0_31 = arith.constant 0 : index
    %c0_32 = arith.constant 0 : index
    %c20 = arith.constant 20 : index
    %32 = vector.load %arg2[%c0_31, %c0_32, %c20] : memref<1x16x362xf32, #tpu.memory_space<vmem>>, vector<1x16x324xf32>
    %33 = vector.shape_cast %32 : vector<1x16x324xf32> to vector<16x324xf32>
    %cst_33 = arith.constant dense<0.000000e+00> : vector<16x324xf32>
    %34 = tpu.matmul %31, %33, %cst_33 {dimension_numbers = #tpu.dot_dimension_numbers<[1], [0], [0], [1], [0, 0, 1, 1], [], []>} : vector<16x16xf32>, vector<16x324xf32>, vector<16x324xf32> -> vector<16x324xf32>
    %35 = arith.addf %29, %34 : vector<16x324xf32>
    %c6 = arith.constant 6 : index
    %c0_34 = arith.constant 0 : index
    %c0_35 = arith.constant 0 : index
    %36 = vector.load %arg5[%c6, %c0_34, %c0_35] : memref<9x16x16xf32, #tpu.memory_space<vmem>>, vector<1x16x16xf32>
    %37 = vector.shape_cast %36 : vector<1x16x16xf32> to vector<16x16xf32>
    %c0_36 = arith.constant 0 : index
    %c0_37 = arith.constant 0 : index
    %c36 = arith.constant 36 : index
    %38 = vector.load %arg2[%c0_36, %c0_37, %c36] : memref<1x16x362xf32, #tpu.memory_space<vmem>>, vector<1x16x324xf32>
    %39 = vector.shape_cast %38 : vector<1x16x324xf32> to vector<16x324xf32>
    %cst_38 = arith.constant dense<0.000000e+00> : vector<16x324xf32>
    %40 = tpu.matmul %37, %39, %cst_38 {dimension_numbers = #tpu.dot_dimension_numbers<[1], [0], [0], [1], [0, 0, 1, 1], [], []>} : vector<16x16xf32>, vector<16x324xf32>, vector<16x324xf32> -> vector<16x324xf32>
    %41 = arith.addf %35, %40 : vector<16x324xf32>
    %c7 = arith.constant 7 : index
    %c0_39 = arith.constant 0 : index
    %c0_40 = arith.constant 0 : index
    %42 = vector.load %arg5[%c7, %c0_39, %c0_40] : memref<9x16x16xf32, #tpu.memory_space<vmem>>, vector<1x16x16xf32>
    %43 = vector.shape_cast %42 : vector<1x16x16xf32> to vector<16x16xf32>
    %c0_41 = arith.constant 0 : index
    %c0_42 = arith.constant 0 : index
    %c37 = arith.constant 37 : index
    %44 = vector.load %arg2[%c0_41, %c0_42, %c37] : memref<1x16x362xf32, #tpu.memory_space<vmem>>, vector<1x16x324xf32>
    %45 = vector.shape_cast %44 : vector<1x16x324xf32> to vector<16x324xf32>
    %cst_43 = arith.constant dense<0.000000e+00> : vector<16x324xf32>
    %46 = tpu.matmul %43, %45, %cst_43 {dimension_numbers = #tpu.dot_dimension_numbers<[1], [0], [0], [1], [0, 0, 1, 1], [], []>} : vector<16x16xf32>, vector<16x324xf32>, vector<16x324xf32> -> vector<16x324xf32>
    %47 = arith.addf %41, %46 : vector<16x324xf32>
    %c8 = arith.constant 8 : index
    %c0_44 = arith.constant 0 : index
    %c0_45 = arith.constant 0 : index
    %48 = vector.load %arg5[%c8, %c0_44, %c0_45] : memref<9x16x16xf32, #tpu.memory_space<vmem>>, vector<1x16x16xf32>
    %49 = vector.shape_cast %48 : vector<1x16x16xf32> to vector<16x16xf32>
    %c0_46 = arith.constant 0 : index
    %c0_47 = arith.constant 0 : index
    %c38 = arith.constant 38 : index
    %50 = vector.load %arg2[%c0_46, %c0_47, %c38] : memref<1x16x362xf32, #tpu.memory_space<vmem>>, vector<1x16x324xf32>
    %51 = vector.shape_cast %50 : vector<1x16x324xf32> to vector<16x324xf32>
    %cst_48 = arith.constant dense<0.000000e+00> : vector<16x324xf32>
    %52 = tpu.matmul %49, %51, %cst_48 {dimension_numbers = #tpu.dot_dimension_numbers<[1], [0], [0], [1], [0, 0, 1, 1], [], []>} : vector<16x16xf32>, vector<16x324xf32>, vector<16x324xf32> -> vector<16x324xf32>
    %53 = arith.addf %47, %52 : vector<16x324xf32>
    %c0_49 = arith.constant 0 : index
    %c0_50 = arith.constant 0 : index
    %54 = vector.load %arg6[%c0_49, %c0_50] : memref<16x1xf32, #tpu.memory_space<vmem>>, vector<16x1xf32>
    %55 = vector.broadcast %54 : vector<16x1xf32> to vector<16x324xf32>
    %56 = arith.addf %53, %55 : vector<16x324xf32>
    %57 = vector.broadcast %0 : vector<1x324xf32> to vector<16x324xf32>
    %58 = arith.mulf %56, %57 : vector<16x324xf32>
    %59 = vector.extract_strided_slice %58 {offsets = [0, 0], sizes = [8, 324], strides = [1, 1]} : vector<16x324xf32> to vector<8x324xf32>
    %c0_51 = arith.constant 0 : index
    %c0_52 = arith.constant 0 : index
    %c0_53 = arith.constant 0 : index
    %60 = vector.load %arg3[%c0_51, %c0_52, %c0_53] : memref<1x16x324xf32, #tpu.memory_space<vmem>>, vector<1x8x324xf32>
    %61 = vector.shape_cast %60 : vector<1x8x324xf32> to vector<8x324xf32>
    %c0_54 = arith.constant 0 : index
    %c0_55 = arith.constant 0 : index
    %c0_56 = arith.constant 0 : index
    %62 = vector.load %arg4[%c0_54, %c0_55, %c0_56] : memref<1x16x324xf32, #tpu.memory_space<vmem>>, vector<1x8x324xf32>
    %63 = vector.shape_cast %62 : vector<1x8x324xf32> to vector<8x324xf32>
    %64 = arith.mulf %59, %59 : vector<8x324xf32>
    %cst_57 = arith.constant dense<0.000000e+00> : vector<8xf32>
    %65 = vector.multi_reduction <add>, %64, %cst_57 [1] : vector<8x324xf32> to vector<8xf32>
    %66 = vector.shape_cast %65 : vector<8xf32> to vector<8x1xf32>
    %cst_58 = arith.constant 1.000000e-24 : f32
    %67 = vector.broadcast %cst_58 : f32 to vector<8x1xf32>
    %68 = arith.maximumf %66, %67 : vector<8x1xf32>
    %69 = math.rsqrt %68 : vector<8x1xf32>
    %70 = arith.mulf %61, %61 : vector<8x324xf32>
    %cst_59 = arith.constant dense<0.000000e+00> : vector<8xf32>
    %71 = vector.multi_reduction <add>, %70, %cst_59 [1] : vector<8x324xf32> to vector<8xf32>
    %72 = vector.shape_cast %71 : vector<8xf32> to vector<8x1xf32>
    %cst_60 = arith.constant 1.000000e-24 : f32
    %73 = vector.broadcast %cst_60 : f32 to vector<8x1xf32>
    %74 = arith.maximumf %72, %73 : vector<8x1xf32>
    %75 = math.rsqrt %74 : vector<8x1xf32>
    %76 = vector.broadcast %69 : vector<8x1xf32> to vector<8x324xf32>
    %77 = arith.mulf %59, %76 : vector<8x324xf32>
    %78 = vector.broadcast %75 : vector<8x1xf32> to vector<8x324xf32>
    %79 = arith.mulf %61, %78 : vector<8x324xf32>
    %cst_61 = arith.constant dense<0.000000e+00> : vector<8x8xf32>
    %80 = tpu.matmul %77, %79, %cst_61 {dimension_numbers = #tpu.dot_dimension_numbers<[1], [1], [0], [0], [0, 0, 1, 0], [], []>} : vector<8x324xf32>, vector<8x324xf32>, vector<8x8xf32> -> vector<8x8xf32>
    %c0_62 = arith.constant 0 : index
    %81 = memref.load %arg1[%c0_62] : memref<2xf32, #tpu.memory_space<smem>>
    %82 = vector.broadcast %81 : f32 to vector<8x8xf32>
    %83 = arith.mulf %80, %82 : vector<8x8xf32>
    %cst_63 = arith.constant dense<0xFF800000> : vector<8xf32>
    %84 = vector.multi_reduction <maximumf>, %83, %cst_63 [1] : vector<8x8xf32> to vector<8xf32>
    %85 = vector.shape_cast %84 : vector<8xf32> to vector<8x1xf32>
    %86 = vector.broadcast %85 : vector<8x1xf32> to vector<8x8xf32>
    %87 = arith.subf %83, %86 : vector<8x8xf32>
    %88 = math.exp %87 : vector<8x8xf32>
    %cst_64 = arith.constant dense<0.000000e+00> : vector<8xf32>
    %89 = vector.multi_reduction <add>, %88, %cst_64 [1] : vector<8x8xf32> to vector<8xf32>
    %90 = vector.shape_cast %89 : vector<8xf32> to vector<8x1xf32>
    %cst_65 = arith.constant 1.000000e+00 : f32
    %91 = vector.broadcast %cst_65 : f32 to vector<8x1xf32>
    %92 = arith.divf %91, %90 : vector<8x1xf32>
    %93 = vector.broadcast %92 : vector<8x1xf32> to vector<8x8xf32>
    %94 = arith.mulf %88, %93 : vector<8x8xf32>
    %cst_66 = arith.constant dense<0.000000e+00> : vector<8x324xf32>
    %95 = tpu.matmul %94, %63, %cst_66 {dimension_numbers = #tpu.dot_dimension_numbers<[1], [0], [0], [1], [0, 0, 1, 1], [], []>} : vector<8x8xf32>, vector<8x324xf32>, vector<8x324xf32> -> vector<8x324xf32>
    %c0_67 = arith.constant 0 : index
    %c0_68 = arith.constant 0 : index
    %96 = vector.load %arg11[%c0_67, %c0_68] : memref<16x324xf32, #tpu.memory_space<vmem>>, vector<8x324xf32>
    tpu.vector_store %arg11[%c0_67, %c0_68], %95 {strides = array<i32>} : memref<16x324xf32, #tpu.memory_space<vmem>>, vector<8x324xf32>,
    %97 = vector.extract_strided_slice %58 {offsets = [8, 0], sizes = [8, 324], strides = [1, 1]} : vector<16x324xf32> to vector<8x324xf32>
    %c0_69 = arith.constant 0 : index
    %c8_70 = arith.constant 8 : index
    %c0_71 = arith.constant 0 : index
    %98 = vector.load %arg3[%c0_69, %c8_70, %c0_71] : memref<1x16x324xf32, #tpu.memory_space<vmem>>, vector<1x8x324xf32>
    %99 = vector.shape_cast %98 : vector<1x8x324xf32> to vector<8x324xf32>
    %c0_72 = arith.constant 0 : index
    %c8_73 = arith.constant 8 : index
    %c0_74 = arith.constant 0 : index
    %100 = vector.load %arg4[%c0_72, %c8_73, %c0_74] : memref<1x16x324xf32, #tpu.memory_space<vmem>>, vector<1x8x324xf32>
    %101 = vector.shape_cast %100 : vector<1x8x324xf32> to vector<8x324xf32>
    %102 = arith.mulf %97, %97 : vector<8x324xf32>
    %cst_75 = arith.constant dense<0.000000e+00> : vector<8xf32>
    %103 = vector.multi_reduction <add>, %102, %cst_75 [1] : vector<8x324xf32> to vector<8xf32>
    %104 = vector.shape_cast %103 : vector<8xf32> to vector<8x1xf32>
    %cst_76 = arith.constant 1.000000e-24 : f32
    %105 = vector.broadcast %cst_76 : f32 to vector<8x1xf32>
    %106 = arith.maximumf %104, %105 : vector<8x1xf32>
    %107 = math.rsqrt %106 : vector<8x1xf32>
    %108 = arith.mulf %99, %99 : vector<8x324xf32>
    %cst_77 = arith.constant dense<0.000000e+00> : vector<8xf32>
    %109 = vector.multi_reduction <add>, %108, %cst_77 [1] : vector<8x324xf32> to vector<8xf32>
    %110 = vector.shape_cast %109 : vector<8xf32> to vector<8x1xf32>
    %cst_78 = arith.constant 1.000000e-24 : f32
    %111 = vector.broadcast %cst_78 : f32 to vector<8x1xf32>
    %112 = arith.maximumf %110, %111 : vector<8x1xf32>
    %113 = math.rsqrt %112 : vector<8x1xf32>
    %114 = vector.broadcast %107 : vector<8x1xf32> to vector<8x324xf32>
    %115 = arith.mulf %97, %114 : vector<8x324xf32>
    %116 = vector.broadcast %113 : vector<8x1xf32> to vector<8x324xf32>
    %117 = arith.mulf %99, %116 : vector<8x324xf32>
    %cst_79 = arith.constant dense<0.000000e+00> : vector<8x8xf32>
    %118 = tpu.matmul %115, %117, %cst_79 {dimension_numbers = #tpu.dot_dimension_numbers<[1], [1], [0], [0], [0, 0, 1, 0], [], []>} : vector<8x324xf32>, vector<8x324xf32>, vector<8x8xf32> -> vector<8x8xf32>
    %c1_80 = arith.constant 1 : index
    %119 = memref.load %arg1[%c1_80] : memref<2xf32, #tpu.memory_space<smem>>
    %120 = vector.broadcast %119 : f32 to vector<8x8xf32>
    %121 = arith.mulf %118, %120 : vector<8x8xf32>
    %cst_81 = arith.constant dense<0xFF800000> : vector<8xf32>
    %122 = vector.multi_reduction <maximumf>, %121, %cst_81 [1] : vector<8x8xf32> to vector<8xf32>
    %123 = vector.shape_cast %122 : vector<8xf32> to vector<8x1xf32>
    %124 = vector.broadcast %123 : vector<8x1xf32> to vector<8x8xf32>
    %125 = arith.subf %121, %124 : vector<8x8xf32>
    %126 = math.exp %125 : vector<8x8xf32>
    %cst_82 = arith.constant dense<0.000000e+00> : vector<8xf32>
    %127 = vector.multi_reduction <add>, %126, %cst_82 [1] : vector<8x8xf32> to vector<8xf32>
    %128 = vector.shape_cast %127 : vector<8xf32> to vector<8x1xf32>
    %cst_83 = arith.constant 1.000000e+00 : f32
    %129 = vector.broadcast %cst_83 : f32 to vector<8x1xf32>
    %130 = arith.divf %129, %128 : vector<8x1xf32>
    %131 = vector.broadcast %130 : vector<8x1xf32> to vector<8x8xf32>
    %132 = arith.mulf %126, %131 : vector<8x8xf32>
    %cst_84 = arith.constant dense<0.000000e+00> : vector<8x324xf32>
    %133 = tpu.matmul %132, %101, %cst_84 {dimension_numbers = #tpu.dot_dimension_numbers<[1], [0], [0], [1], [0, 0, 1, 1], [], []>} : vector<8x8xf32>, vector<8x324xf32>, vector<8x324xf32> -> vector<8x324xf32>
    %c8_85 = arith.constant 8 : index
    %c0_86 = arith.constant 0 : index
    %134 = vector.load %arg11[%c8_85, %c0_86] : memref<16x324xf32, #tpu.memory_space<vmem>>, vector<8x324xf32>
    tpu.vector_store %arg11[%c8_85, %c0_86], %133 {strides = array<i32>} : memref<16x324xf32, #tpu.memory_space<vmem>>, vector<8x324xf32>,
    %c0_87 = arith.constant 0 : index
    %c0_88 = arith.constant 0 : index
    %135 = vector.load %arg8[%c0_87, %c0_88] : memref<16x16xf32, #tpu.memory_space<vmem>>, vector<16x16xf32>
    %c0_89 = arith.constant 0 : index
    %c0_90 = arith.constant 0 : index
    %136 = vector.load %arg11[%c0_89, %c0_90] : memref<16x324xf32, #tpu.memory_space<vmem>>, vector<16x324xf32>
    %cst_91 = arith.constant dense<0.000000e+00> : vector<16x324xf32>
    %137 = tpu.matmul %135, %136, %cst_91 {dimension_numbers = #tpu.dot_dimension_numbers<[1], [0], [0], [1], [0, 0, 1, 1], [], []>} : vector<16x16xf32>, vector<16x324xf32>, vector<16x324xf32> -> vector<16x324xf32>
    %c0_92 = arith.constant 0 : index
    %c0_93 = arith.constant 0 : index
    %138 = vector.load %arg9[%c0_92, %c0_93] : memref<16x1xf32, #tpu.memory_space<vmem>>, vector<16x1xf32>
    %139 = vector.broadcast %138 : vector<16x1xf32> to vector<16x324xf32>
    %140 = arith.addf %137, %139 : vector<16x324xf32>
    %c0_94 = arith.constant 0 : index
    %c0_95 = arith.constant 0 : index
    %c0_96 = arith.constant 0 : index
    %141 = vector.load %arg10[%c0_94, %c0_95, %c0_96] : memref<1x16x324xf32, #tpu.memory_space<vmem>>, vector<1x16x324xf32>
    %142 = vector.shape_cast %141 : vector<1x16x324xf32> to vector<16x324xf32>
    %143 = vector.shape_cast %140 : vector<16x324xf32> to vector<1x16x324xf32>
    tpu.vector_store %arg10[%c0_94, %c0_95, %c0_96], %143 {strides = array<i32>} : memref<1x16x324xf32, #tpu.memory_space<vmem>>, vector<1x16x324xf32>,
    return
  }
  func.func @transform_0(%arg0: i32) -> i32 {
    %c0_i32 = arith.constant 0 : i32
    %c0_i32_0 = arith.constant 0 : i32
    return %c0_i32 : i32
  }
  func.func @transform_1(%arg0: i32) -> (i32, i32, i32) {
    %c0_i32 = arith.constant 0 : i32
    %c0_i32_0 = arith.constant 0 : i32
    %c0_i32_1 = arith.constant 0 : i32
    return %arg0, %c0_i32, %c0_i32_0 : i32, i32, i32
  }
  func.func @transform_2(%arg0: i32) -> (i32, i32, i32) {
    %c0_i32 = arith.constant 0 : i32
    %c0_i32_0 = arith.constant 0 : i32
    %c0_i32_1 = arith.constant 0 : i32
    return %arg0, %c0_i32, %c0_i32_0 : i32, i32, i32
  }
  func.func @transform_3(%arg0: i32) -> (i32, i32, i32) {
    %c0_i32 = arith.constant 0 : i32
    %c0_i32_0 = arith.constant 0 : i32
    %c0_i32_1 = arith.constant 0 : i32
    return %arg0, %c0_i32, %c0_i32_0 : i32, i32, i32
  }
  func.func @transform_4(%arg0: i32) -> (i32, i32, i32) {
    %c0_i32 = arith.constant 0 : i32
    %c0_i32_0 = arith.constant 0 : i32
    %c0_i32_1 = arith.constant 0 : i32
    %c0_i32_2 = arith.constant 0 : i32
    return %c0_i32, %c0_i32_0, %c0_i32_1 : i32, i32, i32
  }
  func.func @transform_5(%arg0: i32) -> (i32, i32) {
    %c0_i32 = arith.constant 0 : i32
    %c0_i32_0 = arith.constant 0 : i32
    %c0_i32_1 = arith.constant 0 : i32
    return %c0_i32, %c0_i32_0 : i32, i32
  }
  func.func @transform_6(%arg0: i32) -> (i32, i32) {
    %c0_i32 = arith.constant 0 : i32
    %c0_i32_0 = arith.constant 0 : i32
    %c0_i32_1 = arith.constant 0 : i32
    return %c0_i32, %c0_i32_0 : i32, i32
  }
  func.func @transform_7(%arg0: i32) -> (i32, i32) {
    %c0_i32 = arith.constant 0 : i32
    %c0_i32_0 = arith.constant 0 : i32
    %c0_i32_1 = arith.constant 0 : i32
    return %c0_i32, %c0_i32_0 : i32, i32
  }
  func.func @transform_8(%arg0: i32) -> (i32, i32) {
    %c0_i32 = arith.constant 0 : i32
    %c0_i32_0 = arith.constant 0 : i32
    %c0_i32_1 = arith.constant 0 : i32
    return %c0_i32, %c0_i32_0 : i32, i32
  }
  func.func @transform_9(%arg0: i32) -> (i32, i32, i32) {
    %c0_i32 = arith.constant 0 : i32
    %c0_i32_0 = arith.constant 0 : i32
    %c0_i32_1 = arith.constant 0 : i32
    return %arg0, %c0_i32, %c0_i32_0 : i32, i32, i32
  }
}

module attributes {stable_mosaic.version = 11 : i64} {
  func.func @_kv_fused_kernel(%arg0: i32, %arg1: memref<1x16x362xf32, #tpu.memory_space<vmem>>, %arg2: memref<32x16xf32, #tpu.memory_space<vmem>>, %arg3: memref<32x1xf32, #tpu.memory_space<vmem>>, %arg4: memref<32x9xf32, #tpu.memory_space<vmem>>, %arg5: memref<32x1xf32, #tpu.memory_space<vmem>>, %arg6: memref<1x362xf32, #tpu.memory_space<vmem>>, %arg7: memref<1x16x324xf32, #tpu.memory_space<vmem>>, %arg8: memref<1x16x324xf32, #tpu.memory_space<vmem>>, %arg9: memref<32x362xf32, #tpu.memory_space<vmem>>) attributes {dimension_semantics = [#tpu.dimension_semantics<parallel>], iteration_bounds = array<i64: 2>, scalar_prefetch = 0 : i64, scratch_operands = 1 : i64, tpu.core_type = #tpu.core_type<tc>, window_params = [{transform_indices = @transform_0, window_bounds = array<i64: 1, 16, 362>}, {pipeline_mode = #tpu.pipeline_mode<synchronous>, transform_indices = @transform_1, window_bounds = array<i64: 32, 16>}, {pipeline_mode = #tpu.pipeline_mode<synchronous>, transform_indices = @transform_2, window_bounds = array<i64: 32, 1>}, {pipeline_mode = #tpu.pipeline_mode<synchronous>, transform_indices = @transform_3, window_bounds = array<i64: 32, 9>}, {pipeline_mode = #tpu.pipeline_mode<synchronous>, transform_indices = @transform_4, window_bounds = array<i64: 32, 1>}, {pipeline_mode = #tpu.pipeline_mode<synchronous>, transform_indices = @transform_5, window_bounds = array<i64: 1, 362>}, {transform_indices = @transform_6, window_bounds = array<i64: 1, 16, 324>}, {transform_indices = @transform_7, window_bounds = array<i64: 1, 16, 324>}]} {
    %c0 = arith.constant 0 : index
    %c0_0 = arith.constant 0 : index
    %c0_1 = arith.constant 0 : index
    %0 = vector.load %arg1[%c0, %c0_0, %c0_1] : memref<1x16x362xf32, #tpu.memory_space<vmem>>, vector<1x16x362xf32>
    %1 = vector.shape_cast %0 : vector<1x16x362xf32> to vector<16x362xf32>
    %c0_2 = arith.constant 0 : index
    %c0_3 = arith.constant 0 : index
    %2 = vector.load %arg2[%c0_2, %c0_3] : memref<32x16xf32, #tpu.memory_space<vmem>>, vector<32x16xf32>
    %cst = arith.constant dense<0.000000e+00> : vector<32x362xf32>
    %3 = tpu.matmul %2, %1, %cst {dimension_numbers = #tpu.dot_dimension_numbers<[1], [0], [0], [1], [0, 0, 1, 1], [], []>} : vector<32x16xf32>, vector<16x362xf32>, vector<32x362xf32> -> vector<32x362xf32>
    %c0_4 = arith.constant 0 : index
    %c0_5 = arith.constant 0 : index
    %4 = vector.load %arg3[%c0_4, %c0_5] : memref<32x1xf32, #tpu.memory_space<vmem>>, vector<32x1xf32>
    %c0_6 = arith.constant 0 : index
    %c0_7 = arith.constant 0 : index
    %5 = vector.load %arg6[%c0_6, %c0_7] : memref<1x362xf32, #tpu.memory_space<vmem>>, vector<1x362xf32>
    %6 = vector.broadcast %4 : vector<32x1xf32> to vector<32x362xf32>
    %7 = vector.broadcast %5 : vector<1x362xf32> to vector<32x362xf32>
    %8 = arith.mulf %6, %7 : vector<32x362xf32>
    %9 = arith.addf %3, %8 : vector<32x362xf32>
    %c0_8 = arith.constant 0 : index
    %c0_9 = arith.constant 0 : index
    %10 = vector.load %arg9[%c0_8, %c0_9] : memref<32x362xf32, #tpu.memory_space<vmem>>, vector<32x362xf32>
    tpu.vector_store %arg9[%c0_8, %c0_9], %9 {strides = array<i32>} : memref<32x362xf32, #tpu.memory_space<vmem>>, vector<32x362xf32>,
    %c0_10 = arith.constant 0 : index
    %c0_11 = arith.constant 0 : index
    %11 = vector.load %arg9[%c0_10, %c0_11] : memref<32x362xf32, #tpu.memory_space<vmem>>, vector<32x324xf32>
    %c0_12 = arith.constant 0 : index
    %c0_13 = arith.constant 0 : index
    %12 = vector.load %arg4[%c0_12, %c0_13] : memref<32x9xf32, #tpu.memory_space<vmem>>, vector<32x1xf32>
    %13 = vector.broadcast %12 : vector<32x1xf32> to vector<32x324xf32>
    %14 = arith.mulf %11, %13 : vector<32x324xf32>
    %c0_14 = arith.constant 0 : index
    %c1 = arith.constant 1 : index
    %15 = vector.load %arg9[%c0_14, %c1] : memref<32x362xf32, #tpu.memory_space<vmem>>, vector<32x324xf32>
    %c0_15 = arith.constant 0 : index
    %c1_16 = arith.constant 1 : index
    %16 = vector.load %arg4[%c0_15, %c1_16] : memref<32x9xf32, #tpu.memory_space<vmem>>, vector<32x1xf32>
    %17 = vector.broadcast %16 : vector<32x1xf32> to vector<32x324xf32>
    %18 = arith.mulf %15, %17 : vector<32x324xf32>
    %19 = arith.addf %14, %18 : vector<32x324xf32>
    %c0_17 = arith.constant 0 : index
    %c2 = arith.constant 2 : index
    %20 = vector.load %arg9[%c0_17, %c2] : memref<32x362xf32, #tpu.memory_space<vmem>>, vector<32x324xf32>
    %c0_18 = arith.constant 0 : index
    %c2_19 = arith.constant 2 : index
    %21 = vector.load %arg4[%c0_18, %c2_19] : memref<32x9xf32, #tpu.memory_space<vmem>>, vector<32x1xf32>
    %22 = vector.broadcast %21 : vector<32x1xf32> to vector<32x324xf32>
    %23 = arith.mulf %20, %22 : vector<32x324xf32>
    %24 = arith.addf %19, %23 : vector<32x324xf32>
    %c0_20 = arith.constant 0 : index
    %c18 = arith.constant 18 : index
    %25 = vector.load %arg9[%c0_20, %c18] : memref<32x362xf32, #tpu.memory_space<vmem>>, vector<32x324xf32>
    %c0_21 = arith.constant 0 : index
    %c3 = arith.constant 3 : index
    %26 = vector.load %arg4[%c0_21, %c3] : memref<32x9xf32, #tpu.memory_space<vmem>>, vector<32x1xf32>
    %27 = vector.broadcast %26 : vector<32x1xf32> to vector<32x324xf32>
    %28 = arith.mulf %25, %27 : vector<32x324xf32>
    %29 = arith.addf %24, %28 : vector<32x324xf32>
    %c0_22 = arith.constant 0 : index
    %c19 = arith.constant 19 : index
    %30 = vector.load %arg9[%c0_22, %c19] : memref<32x362xf32, #tpu.memory_space<vmem>>, vector<32x324xf32>
    %c0_23 = arith.constant 0 : index
    %c4 = arith.constant 4 : index
    %31 = vector.load %arg4[%c0_23, %c4] : memref<32x9xf32, #tpu.memory_space<vmem>>, vector<32x1xf32>
    %32 = vector.broadcast %31 : vector<32x1xf32> to vector<32x324xf32>
    %33 = arith.mulf %30, %32 : vector<32x324xf32>
    %34 = arith.addf %29, %33 : vector<32x324xf32>
    %c0_24 = arith.constant 0 : index
    %c20 = arith.constant 20 : index
    %35 = vector.load %arg9[%c0_24, %c20] : memref<32x362xf32, #tpu.memory_space<vmem>>, vector<32x324xf32>
    %c0_25 = arith.constant 0 : index
    %c5 = arith.constant 5 : index
    %36 = vector.load %arg4[%c0_25, %c5] : memref<32x9xf32, #tpu.memory_space<vmem>>, vector<32x1xf32>
    %37 = vector.broadcast %36 : vector<32x1xf32> to vector<32x324xf32>
    %38 = arith.mulf %35, %37 : vector<32x324xf32>
    %39 = arith.addf %34, %38 : vector<32x324xf32>
    %c0_26 = arith.constant 0 : index
    %c36 = arith.constant 36 : index
    %40 = vector.load %arg9[%c0_26, %c36] : memref<32x362xf32, #tpu.memory_space<vmem>>, vector<32x324xf32>
    %c0_27 = arith.constant 0 : index
    %c6 = arith.constant 6 : index
    %41 = vector.load %arg4[%c0_27, %c6] : memref<32x9xf32, #tpu.memory_space<vmem>>, vector<32x1xf32>
    %42 = vector.broadcast %41 : vector<32x1xf32> to vector<32x324xf32>
    %43 = arith.mulf %40, %42 : vector<32x324xf32>
    %44 = arith.addf %39, %43 : vector<32x324xf32>
    %c0_28 = arith.constant 0 : index
    %c37 = arith.constant 37 : index
    %45 = vector.load %arg9[%c0_28, %c37] : memref<32x362xf32, #tpu.memory_space<vmem>>, vector<32x324xf32>
    %c0_29 = arith.constant 0 : index
    %c7 = arith.constant 7 : index
    %46 = vector.load %arg4[%c0_29, %c7] : memref<32x9xf32, #tpu.memory_space<vmem>>, vector<32x1xf32>
    %47 = vector.broadcast %46 : vector<32x1xf32> to vector<32x324xf32>
    %48 = arith.mulf %45, %47 : vector<32x324xf32>
    %49 = arith.addf %44, %48 : vector<32x324xf32>
    %c0_30 = arith.constant 0 : index
    %c38 = arith.constant 38 : index
    %50 = vector.load %arg9[%c0_30, %c38] : memref<32x362xf32, #tpu.memory_space<vmem>>, vector<32x324xf32>
    %c0_31 = arith.constant 0 : index
    %c8 = arith.constant 8 : index
    %51 = vector.load %arg4[%c0_31, %c8] : memref<32x9xf32, #tpu.memory_space<vmem>>, vector<32x1xf32>
    %52 = vector.broadcast %51 : vector<32x1xf32> to vector<32x324xf32>
    %53 = arith.mulf %50, %52 : vector<32x324xf32>
    %54 = arith.addf %49, %53 : vector<32x324xf32>
    %c0_32 = arith.constant 0 : index
    %c19_33 = arith.constant 19 : index
    %55 = vector.load %arg6[%c0_32, %c19_33] : memref<1x362xf32, #tpu.memory_space<vmem>>, vector<1x324xf32>
    %c0_34 = arith.constant 0 : index
    %c0_35 = arith.constant 0 : index
    %56 = vector.load %arg5[%c0_34, %c0_35] : memref<32x1xf32, #tpu.memory_space<vmem>>, vector<32x1xf32>
    %57 = vector.broadcast %56 : vector<32x1xf32> to vector<32x324xf32>
    %58 = arith.addf %54, %57 : vector<32x324xf32>
    %59 = vector.broadcast %55 : vector<1x324xf32> to vector<32x324xf32>
    %60 = arith.mulf %58, %59 : vector<32x324xf32>
    %61 = vector.extract_strided_slice %60 {offsets = [0, 0], sizes = [16, 324], strides = [1, 1]} : vector<32x324xf32> to vector<16x324xf32>
    %c0_36 = arith.constant 0 : index
    %c0_37 = arith.constant 0 : index
    %c0_38 = arith.constant 0 : index
    %62 = vector.load %arg7[%c0_36, %c0_37, %c0_38] : memref<1x16x324xf32, #tpu.memory_space<vmem>>, vector<1x16x324xf32>
    %63 = vector.shape_cast %62 : vector<1x16x324xf32> to vector<16x324xf32>
    %64 = vector.shape_cast %61 : vector<16x324xf32> to vector<1x16x324xf32>
    tpu.vector_store %arg7[%c0_36, %c0_37, %c0_38], %64 {strides = array<i32>} : memref<1x16x324xf32, #tpu.memory_space<vmem>>, vector<1x16x324xf32>,
    %65 = vector.extract_strided_slice %60 {offsets = [16, 0], sizes = [16, 324], strides = [1, 1]} : vector<32x324xf32> to vector<16x324xf32>
    %c0_39 = arith.constant 0 : index
    %c0_40 = arith.constant 0 : index
    %c0_41 = arith.constant 0 : index
    %66 = vector.load %arg8[%c0_39, %c0_40, %c0_41] : memref<1x16x324xf32, #tpu.memory_space<vmem>>, vector<1x16x324xf32>
    %67 = vector.shape_cast %66 : vector<1x16x324xf32> to vector<16x324xf32>
    %68 = vector.shape_cast %65 : vector<16x324xf32> to vector<1x16x324xf32>
    tpu.vector_store %arg8[%c0_39, %c0_40, %c0_41], %68 {strides = array<i32>} : memref<1x16x324xf32, #tpu.memory_space<vmem>>, vector<1x16x324xf32>,
    return
  }
  func.func @transform_0(%arg0: i32) -> (i32, i32, i32) {
    %c0_i32 = arith.constant 0 : i32
    %c0_i32_0 = arith.constant 0 : i32
    %c0_i32_1 = arith.constant 0 : i32
    return %arg0, %c0_i32, %c0_i32_0 : i32, i32, i32
  }
  func.func @transform_1(%arg0: i32) -> (i32, i32) {
    %c0_i32 = arith.constant 0 : i32
    %c0_i32_0 = arith.constant 0 : i32
    %c0_i32_1 = arith.constant 0 : i32
    return %c0_i32, %c0_i32_0 : i32, i32
  }
  func.func @transform_2(%arg0: i32) -> (i32, i32) {
    %c0_i32 = arith.constant 0 : i32
    %c0_i32_0 = arith.constant 0 : i32
    %c0_i32_1 = arith.constant 0 : i32
    return %c0_i32, %c0_i32_0 : i32, i32
  }
  func.func @transform_3(%arg0: i32) -> (i32, i32) {
    %c0_i32 = arith.constant 0 : i32
    %c0_i32_0 = arith.constant 0 : i32
    %c0_i32_1 = arith.constant 0 : i32
    return %c0_i32, %c0_i32_0 : i32, i32
  }
  func.func @transform_4(%arg0: i32) -> (i32, i32) {
    %c0_i32 = arith.constant 0 : i32
    %c0_i32_0 = arith.constant 0 : i32
    %c0_i32_1 = arith.constant 0 : i32
    return %c0_i32, %c0_i32_0 : i32, i32
  }
  func.func @transform_5(%arg0: i32) -> (i32, i32) {
    %c0_i32 = arith.constant 0 : i32
    %c0_i32_0 = arith.constant 0 : i32
    %c0_i32_1 = arith.constant 0 : i32
    return %c0_i32, %c0_i32_0 : i32, i32
  }
  func.func @transform_6(%arg0: i32) -> (i32, i32, i32) {
    %c0_i32 = arith.constant 0 : i32
    %c0_i32_0 = arith.constant 0 : i32
    %c0_i32_1 = arith.constant 0 : i32
    return %arg0, %c0_i32, %c0_i32_0 : i32, i32, i32
  }
  func.func @transform_7(%arg0: i32) -> (i32, i32, i32) {
    %c0_i32 = arith.constant 0 : i32
    %c0_i32_0 = arith.constant 0 : i32
    %c0_i32_1 = arith.constant 0 : i32
    return %arg0, %c0_i32, %c0_i32_0 : i32, i32, i32
  }
}

</mosaic_0001>

<bundles_post_ra>
// kernel: _lambda_.2
= control target key start
LH: loop header
LB: loop body
LE: loop exit
PB: predicated region body
PF: predicated region fallthrough
CT: control target
= control target key end

     0   :  { %s1703_s24 = smov 0   ;;  %s2477_s0 = inlined_call_operand.vmem [shape: f32[2,16,362], index: 0, kind: input, shape index: {}]   ;;  %s2478_s1 = inlined_call_operand.vmem [shape: f32[32,16], index: 1, kind: input, shape index: {}]   ;;  %s2479_s2 = inlined_call_operand.vmem [shape: f32[32,1], index: 2, kind: input, shape index: {}]   ;;  %s2480_s3 = inlined_call_operand.vmem [shape: f32[32,9], index: 3, kind: input, shape index: {}]   ;;  %s2481_s4 = inlined_call_operand.vmem [shape: f32[32,1], index: 4, kind: input, shape index: {}]   ;;  %s2482_s5 = inlined_call_operand.vmem [shape: f32[1,362], index: 5, kind: input, shape index: {}]   ;;  %s2483_s6 = inlined_call_operand.vmem [shape: f32[2,16,324], index: 6, kind: output, shape index: {0}]   ;;  %s2484_s7 = inlined_call_operand.vmem [shape: f32[2,16,324], index: 7, kind: output, shape index: {1}]  }
   0x1 LB: > { %s1553_s25 = sadd.s32 4294967295, %s1643_s24   ;;  %p1557_p0 = scmp.ge.s32.totalorder %s1643_s24, 1  ;;  %s1643_s24 = sphi %s1703_s24, %s18_s24  }
   0x2   : > { %p240_p1 = scmp.lt.s32.totalorder %s1643_s24, 3 }
   0x4   : > { %p241_p2 = pnand %p1557_p0, %p240_p1 }
   0x5   : > { %p277_p3 = scmp.lt.s32.totalorder (!%p241_p2), %s1553_s25, 1  ;;  %s1655_s12 = smov (!%p241_p2), 127  }
   0x6   : > { %244 = sbr.rel (%p241_p2) target bundleno = 552 (0x228), region = 44  ;;  %s1656_s13 = smov (!%p241_p2), 126  }
   0x7   : > { %s1658_s15 = smov (!%p241_p2), 109   ;;  %s1659_s16 = smov (!%p241_p2), 108  }
   0x8   : > { %s1660_s17 = smov (!%p241_p2), 92   ;;  %s1661_s18 = smov (!%p241_p2), 91  }
   0x9   : > { %s1662_s28 = smov (!%p241_p2), 90  }
   0xb   : > { %v304_v0 = vld [vmem:[%s2479_s2 + $0x10] sm:$0xff]  ;;  %v1645_v1 = vmov 0   ;;  %v1646_v2 = vmov 1   ;;  %v1718_v3 = vld [vmem:[%s2480_s3] sm:$0xff]  ;;  %s2486_s25 = smov (!%p277_p3, %s1553_s25), 1  ;;  %v305_v4 = vld [vmem:[%s2479_s2 + $0x18] sm:$0xff]  ;;  %v328_v48 = vlaneseq }
   0xc   : > { %1618 = vset.pattern.permute.xlu1 %v1645_v1  ;;  %1619 = vset.pattern.permute.xlu0 %v1646_v2  ;;  %v1647_v5 = vmov 0.0   ;;  %v1727_v6 = vld [vmem:[%s2480_s3 + $0x18] sm:$0xff]  ;;  %s1729_s11 = smul.u32 48, %s2486_s25  ;;  %v1738_v7 = vld [vmem:[%s2480_s3 + $0x8] sm:$0xff]  ;;  %v298_v12 = vld [vmem:[%s2478_s1] sm:$0xff]  ;;  %vm355_vm0 = vcmask 130048  }
   0xd   : > { %319 = vperm.xlu1 %1618, %v304_v0   ;;  %604 = vperm.xlu0 %1619, %v1718_v3   ;;  %v301_v13 = vld [vmem:[%s2478_s1 + $0x18] sm:$0xff]  ;;  %v299_v16 = vld [vmem:[%s2478_s1 + $0x8] sm:$0xff]  ;;  %v300_v17 = vld [vmem:[%s2478_s1 + $0x10] sm:$0xff]  ;;  %v1648_v18 = vmov 2   ;;  %v1649_v20 = vmov 3   ;;  %v1650_v21 = vmov 4  }
   0xe   : > { %432 = vmatprep.mubr.f32.mxu0 %v1647_v5  ;;  %450 = vmatprep.mubr.f32.mxu1 %v1647_v5  ;;  %s281_s14 = scalar_lea.vmem %s2477_s0, %s1729_s11  ;;  %v569_v19 = vld [vmem:[%s2480_s3 + $0x10] sm:$0xff]  ;;  %v1651_v22 = vmov 5   ;;  %v1652_v23 = vmov 6   ;;  %v1653_v24 = vmov 7   ;;  %v1654_v25 = vmov 8   ;;  %v302_v26 = vld [vmem:[%s2479_s2] sm:$0xff]  ;;  %s286_s10 = scalar_lea.vmem %s2483_s6, %s1729_s11 }
   0xf   : > { %v296_v8 = vld [vmem:[%s281_s14 + $0x20] sm:$0xff]  ;;  %v295_v9 = vld [vmem:[%s281_s14 + $0x18] sm:$0xff]  ;;  %v293_v10 = vld [vmem:[%s281_s14 + $0x8] sm:$0xff]  ;;  %v1841_v51 = vshrl.u32 %v328_v48, 7  ;;  %vm544_vm1 = vcmask 867328   ;;  %vm667_vm2 = vcmask 1039360  }
  0x10   : > { %396 = vmatprep.subr.mxu0 %v296_v8  ;;  %1587 = vmatprep.subr.mxu1 %v296_v8  ;;  %v292_v11 = vld [vmem:[%s281_s14] sm:$0xff]  ;;  %v297_v14 = vld [vmem:[%s281_s14 + $0x28] sm:$0xff]  ;;  %v294_v15 = vld [vmem:[%s281_s14 + $0x10] sm:$0xff]  ;;  %s1657_s14 = smov 110   ;;  %vm764_vm3 = vcmask 1031168   ;;  %vm861_vm4 = vcmask 900096  }
  0x11   : > { %324 = vperm.xlu1 %1618, %v305_v4   ;;  %616 = vperm.xlu0 %1619, %v1727_v6   ;;  %v303_v27 = vld [vmem:[%s2479_s2 + $0x8] sm:$0xff]  ;;  %v330_v53 = vsub.s32 0, %v1841_v51  ;;  %v306_v55 = vld [vmem:[%s2482_s5] sm:$0x7]  ;;  %v334_v56 = vsub.s32 1, %v1841_v51  ;;  %v338_v62 = vsub.s32 2, %v1841_v51 }
  0x12   : > { %397 = vmatpush1.msra.mxu0 %v295_v9  ;;  %1589 = vmatpush1.msra.mxu1 %v295_v9  ;;  %vm958_vm5 = vcmask 891904   ;;  %vm1055_vm6 = vcmask 883712   ;;  %vm1152_vm7 = vcmask 752640   ;;  %vm1249_vm8 = vcmask 744448  }
  0x13   : > { %398 = vmatprep.subr.mxu0 %v293_v10  ;;  %1588 = vmatprep.subr.mxu1 %v293_v10  ;;  %v331_v57 = vrot.slane %v306_v55, %v330_v53  ;;  %v335_v61 = vrot.slane %v306_v55, %v334_v56  ;;  %vm1346_vm9 = vcmask 736256   ;;  %vm1454_vm10 = vcmask 556032  }
  0x14   : > { %399 = vmatpush1.msra.mxu0 %v292_v11  ;;  %1590 = vmatpush1.msra.mxu1 %v292_v11 }
  0x15   : > { %578 = vperm.xlu1 %1618, %v1738_v7   ;;  %1561 = vmatmul.mubr.msk.f32.vlgmr.msra.gmra.mxu0 %vm355_vm0, %v298_v12 }
  0x16   : > { %1564 = vmatmul.mubr.msk.f32.vlgmr.msra.gmra.mxu1 %vm355_vm0, %v301_v13  ;;  %1577 = vmatprep.subr.mxu1 %v297_v14 }
  0x17   : > { %1578 = vmatpush3.msra.mxu1 %v297_v14  ;;  %438 = vmatprep.mubr.f32.mxu0 %v1647_v5 }
  0x18   : > { %1579 = vmatprep.subr.mxu1 %v294_v15  ;;  %1581 = vmatprep.mubr.msk.f32.mxu1 %vm355_vm0, %v298_v12 }
  0x19   : > { %588 = vperm.xlu1 %1618, %v1727_v6   ;;  %1580 = vmatpush3.msra.mxu1 %v294_v15 }
  0x1a   : > { %1562 = vmatmul.mubr.msk.f32.gmra.mxu0 %vm355_vm0, %v299_v16  ;;  %1582 = vmatmul.mubr.msk.f32.vlgmr.msra.gmra.mxu1 %vm355_vm0, %v299_v16 }
  0x1b   : > { %1622 = vset.pattern.permute.xlu0 %v1648_v18  ;;  %444 = vmatprep.mubr.f32.mxu0 %v1647_v5 }
  0x1c   : > { %1584 = vmatprep.mubr.msk.f32.mxu1 %vm355_vm0, %v300_v17  ;;  %705 = vperm.xlu0 %1622, %v1738_v7  }
  0x1d   : > { %1620 = vset.pattern.permute.xlu1 %v1646_v2 }
  0x1e   : > { %608 = vperm.xlu1 %1620, %v1738_v7   ;;  %1563 = vmatmul.mubr.msk.f32.gmra.mxu0 %vm355_vm0, %v300_v17 }
  0x1f   : > { %1585 = vmatmul.mubr.msk.f32.gmra.mxu1 %vm355_vm0, %v301_v13 }
  0x20   : > { %1623 = vset.pattern.permute.xlu0 %v1649_v20 }
  0x21   : > { %798 = vperm.xlu0 %1623, %v1718_v3  }
  0x22   : > { %612 = vperm.xlu1 %1620, %v569_v19  }
  0x25   : > { %810 = vperm.xlu0 %1623, %v1727_v6  }
  0x26   : > { %1621 = vset.pattern.permute.xlu1 %v1648_v18 }
  0x27   : > { %701 = vperm.xlu1 %1621, %v1718_v3  }
  0x29   : > { %1626 = vset.pattern.permute.xlu0 %v1650_v21 }
  0x2a   : > { %899 = vperm.xlu0 %1626, %v1738_v7  }
  0x2b   : > { %709 = vperm.xlu1 %1621, %v569_v19  }
  0x2e   : > { %1627 = vset.pattern.permute.xlu0 %v1651_v22 }
  0x2f   : > { %713 = vperm.xlu1 %1621, %v1727_v6   ;;  %992 = vperm.xlu0 %1627, %v1718_v3  }
  0x33   : > { %1624 = vset.pattern.permute.xlu1 %v1649_v20  ;;  %1004 = vperm.xlu0 %1627, %v1727_v6  }
  0x34   : > { %802 = vperm.xlu1 %1624, %v1738_v7  }
  0x37   : > { %1630 = vset.pattern.permute.xlu0 %v1652_v23 }
  0x38   : > { %806 = vperm.xlu1 %1624, %v569_v19   ;;  %1093 = vperm.xlu0 %1630, %v1738_v7  }
  0x3c   : > { %1625 = vset.pattern.permute.xlu1 %v1650_v21  ;;  %1631 = vset.pattern.permute.xlu0 %v1653_v24 }
  0x3d   : > { %895 = vperm.xlu1 %1625, %v1718_v3   ;;  %1186 = vperm.xlu0 %1631, %v1718_v3  }
  0x41   : > { %903 = vperm.xlu1 %1625, %v569_v19   ;;  %1198 = vperm.xlu0 %1631, %v1727_v6  }
  0x45   : > { %907 = vperm.xlu1 %1625, %v1727_v6   ;;  %1634 = vset.pattern.permute.xlu0 %v1654_v25 }
  0x46   : > { %1287 = vperm.xlu0 %1634, %v1738_v7  }
  0x49   : > { %1628 = vset.pattern.permute.xlu1 %v1651_v22 }
  0x4a   : > { %996 = vperm.xlu1 %1628, %v1738_v7   ;;  %1635 = vset.pattern.permute.xlu0 %v1645_v1 }
  0x4b   : > { %309 = vperm.xlu0 %1635, %v302_v26  }
  0x4e   : > { %1000 = vperm.xlu1 %1628, %v569_v19  }
  0x4f   : > { %314 = vperm.xlu0 %1635, %v303_v27  }
  0x52   : > { %1629 = vset.pattern.permute.xlu1 %v1652_v23 }
  0x53   : > { %1089 = vperm.xlu1 %1629, %v1718_v3   ;;  %573 = vperm.xlu0 %1635, %v1718_v3  }
  0x57   : > { %1097 = vperm.xlu1 %1629, %v569_v19   ;;  %583 = vperm.xlu0 %1635, %v569_v19  }
  0x5b   : > { %1101 = vperm.xlu1 %1629, %v1727_v6  }
  0x5f   : > { %1632 = vset.pattern.permute.xlu1 %v1653_v24 }
  0x60   : > { %1190 = vperm.xlu1 %1632, %v1738_v7   ;;  %v339_v7 = vrot.slane %v306_v55, %v338_v62 }
  0x64   : > { %1194 = vperm.xlu1 %1632, %v569_v19  }
  0x68   : > { %1633 = vset.pattern.permute.xlu1 %v1654_v25 }
  0x69   : > { %1283 = vperm.xlu1 %1633, %v1718_v3  }
  0x6d   : > { %1291 = vperm.xlu1 %1633, %v569_v19  }
  0x71   : > { %1295 = vperm.xlu1 %1633, %v1727_v6  }
  0x75   : > { %1636 = vset.pattern.permute.xlu1 %v1645_v1 }
  0x88   : > { %v1797_v28 = vpop.permute.xlu1 %319  ;;  %v1799_v29 = vpop.permute.xlu0 %604 }
  0x89   : > { %v349_v25 = vmul.f32 %v331_v57, %v1797_v28 }
  0x8c   : > { %v1801_v30 = vpop.permute.xlu1 %324  ;;  %v1803_v31 = vpop.permute.xlu0 %616 }
  0x8d   : > { %v352_v0 = vmul.f32 %v331_v57, %v1801_v30  ;;  %v353_v6 = vmul.f32 %v335_v61, %v1801_v30  ;;  %v354_v55 = vmul.f32 %v339_v7, %v1801_v30 }
  0x90   : > { %v1805_v32 = vpop.permute.xlu1 %578 }
  0x94   : > { %v1809_v34 = vpop.permute.xlu1 %588 }
  0x97   : > { %v1807_v33 = vpop.permute.xlu0 %705 }
  0x99   : > { %v1815_v37 = vpop.permute.xlu1 %608 }
  0x9c   : > { %v1811_v35 = vpop.permute.xlu0 %798 }
  0x9d   : > { %v1819_v39 = vpop.permute.xlu1 %612 }
  0xa0   : > { %v1813_v36 = vpop.permute.xlu0 %810 }
  0xa2   : > { %v1823_v41 = vpop.permute.xlu1 %701 }
  0xa5   : > { %v1817_v38 = vpop.permute.xlu0 %899 }
  0xa6   : > { %v1827_v43 = vpop.permute.xlu1 %709 }
  0xaa   : > { %v1821_v40 = vpop.permute.xlu0 %992  ;;  %v1831_v45 = vpop.permute.xlu1 %713 }
  0xae   : > { %v1825_v42 = vpop.permute.xlu0 %1004 }
  0xaf   : > { %v1835_v47 = vpop.permute.xlu1 %802 }
  0xb3   : > { %v1829_v44 = vpop.permute.xlu0 %1093  ;;  %v1839_v50 = vpop.permute.xlu1 %806 }
  0xb8   : > { %v1833_v46 = vpop.permute.xlu0 %1186  ;;  %v1846_v54 = vpop.permute.xlu1 %895 }
  0xbc   : > { %v1837_v49 = vpop.permute.xlu0 %1198  ;;  %v1854_v60 = vpop.permute.xlu1 %903 }
  0xc0   : > { %v1871_v12 = vpop.permute.xlu1 %907 }
  0xc1   : > { %v1843_v52 = vpop.permute.xlu0 %1287 }
  0xc6   : > { %v310_v58 = vpop.permute.xlu0 %309 }
  0xc7   : > { %v343_v59 = vmul.f32 %v331_v57, %v310_v58  ;;  %v344_v3 = vmul.f32 %v335_v61, %v310_v58  ;;  %v345_v22 = vmul.f32 %v339_v7, %v310_v58 }
  0xca   : > { %v315_v8 = vpop.permute.xlu0 %314 }
  0xcb   : > { %v346_v14 = vmul.f32 %v331_v57, %v315_v8  ;;  %v348_v15 = vmul.f32 %v339_v7, %v315_v8  ;;  %v347_v21 = vmul.f32 %v335_v61, %v315_v8 }
  0xd5   : > { %v434_v63 = vpop.f32.mrf.mxu0 }
  0xd6   : > { %v1860_v1 = vadd.f32 %v434_v63, %v343_v59  ;;  %v452_v2 = vpop.f32.mrf.mxu1 }
  0xd7   : > { %v1862_v4 = vadd.f32 %v452_v2, %v352_v0  ;;  %v436_v5 = vpop.f32.mrf.mxu0  ;;  %v1891_v0 = vpop.permute.xlu1 %996 }
  0xd8   : > { %v1867_v9 = vadd.f32 %v436_v5, %v344_v3  ;;  %v454_v10 = vpop.f32.mrf.mxu1  ;;  %v619_v11 = vmul.f32 %v1799_v29, %v1860_v1  ;;  %v716_v59 = vmul.f32 %v1823_v41, %v1860_v1  ;;  %v350_v3 = vmul.f32 %v335_v61, %v1797_v28 }
  0xd9   : > { %v1873_v13 = vadd.f32 %v454_v10, %v353_v6  ;;  %v628_v16 = vmul.f32 %v1803_v31, %v1862_v4  ;;  %v725_v26 = vmul.f32 %v1831_v45, %v1862_v4  ;;  %v351_v5 = vmul.f32 %v339_v7, %v1797_v28 }
  0xda   : > { %v440_v17 = vpop.f32.mrf.mxu0  ;;  %v1583_v18 = vpop.f32.mrf.mxu1  ;;  %643 = vrot.lane.b32.xlu1 %v619_v11, %s1655_s12  ;;  %v813_v8 = vmul.f32 %v1811_v35, %v1860_v1  ;;  %v919_v28 = vmul.f32 %v1871_v12, %v1862_v4  ;;  %v910_v61 = vmul.f32 %v1846_v54, %v1860_v1 }
  0xdb   : > { %v1878_v19 = vadd.f32 %v440_v17, %v346_v14  ;;  %v529_v20 = vadd.f32 %v1583_v18, %v348_v15  ;;  %661 = vrot.lane.b32.xlu0 %v628_v16, %s1655_s12  ;;  %v822_v14 = vmul.f32 %v1813_v36, %v1862_v4  ;;  %v1913_v7 = vpop.permute.xlu1 %1000  ;;  %v1007_v15 = vmul.f32 %v1821_v40, %v1860_v1 }
  0xdc   : > { %v442_v23 = vpop.f32.mrf.mxu0  ;;  %v523_v24 = vpop.f32.mrf.mxu1  ;;  %v1016_v16 = vmul.f32 %v1825_v42, %v1862_v4  ;;  %v629_v18 = vmul.f32 %v1803_v31, %v1873_v13 }
  0xdd   : > { %548 = vst.msk [vmem:[#allocation2 + $0x28] sm:$0xff] %vm544_vm1, %v529_v20  ;;  %v1885_v27 = vadd.f32 %v442_v23, %v347_v21  ;;  %v524_v48 = vadd.f32 %v523_v24, %v345_v22  ;;  %v717_v21 = vmul.f32 %v1823_v41, %v1867_v9  ;;  %v620_v22 = vmul.f32 %v1799_v29, %v1867_v9 }
  0xde   : > { %v446_v58 = vpop.f32.mrf.mxu0  ;;  %758 = vrot.lane.b32.xlu1 %v725_v26, %s1656_s13  ;;  %v823_v23 = vmul.f32 %v1813_v36, %v1873_v13  ;;  %v726_v24 = vmul.f32 %v1831_v45, %v1873_v13  ;;  %v814_v26 = vmul.f32 %v1811_v35, %v1867_v9 }
  0xdf   : > { %v1586_v63 = vpop.f32.mrf.mxu1  ;;  %545 = vst.msk [vmem:[#allocation2 + $0x10] sm:$0xff] %vm544_vm1, %v524_v48  ;;  %v1894_v57 = vadd.f32 %v446_v58, %v349_v25  ;;  %740 = vrot.lane.b32.xlu0 %v716_v59, %s1656_s13  ;;  %v1923_v17 = vpop.permute.xlu1 %1089  ;;  %v911_v25 = vmul.f32 %v1846_v54, %v1867_v9  ;;  %v1017_v48 = vmul.f32 %v1825_v42, %v1873_v13 }
  0xe0   : > { %v539_v2 = vadd.f32 %v1586_v63, %v354_v55  ;;  %v448_v30 = vpop.f32.mrf.mxu0  ;;  %v1104_v20 = vmul.f32 %v1923_v17, %v1860_v1  ;;  %v920_v55 = vmul.f32 %v1871_v12, %v1873_v13  ;;  %v1105_v59 = vmul.f32 %v1923_v17, %v1867_v9 }
  0xe1   : > { %v533_v6 = vpop.f32.mrf.mxu1  ;;  %v1902_v10 = vadd.f32 %v448_v30, %v350_v3  ;;  %v1008_v58 = vmul.f32 %v1821_v40, %v1867_v9  ;;  %v719_v63 = vmul.f32 %v1807_v33, %v1878_v19  ;;  %v622_v3 = vmul.f32 %v1815_v37, %v1878_v19 }
  0xe2   : > { %554 = vst.msk [vmem:[#allocation2 + $0x58] sm:$0xff] %vm544_vm1, %v539_v2  ;;  %v534_v11 = vadd.f32 %v533_v6, %v351_v5  ;;  %837 = vrot.lane.b32.xlu1 %v813_v8, %s1657_s14  ;;  %v913_v6 = vmul.f32 %v1817_v38, %v1878_v19  ;;  %v816_v8 = vmul.f32 %v1835_v47, %v1878_v19 }
  0xe3   : > { %855 = vrot.lane.b32.xlu0 %v822_v14, %s1657_s14 }
  0xe4   : > { %551 = vst.msk [vmem:[#allocation2 + $0x40] sm:$0xff] %vm544_vm1, %v534_v11  ;;  %v1963_v2 = vld [vmem:[#allocation2 + $0x28] sm:$0xff] }
  0xe5   : > { %v721_v5 = vmul.f32 %v1807_v33, %v1963_v2  ;;  %v624_v30 = vmul.f32 %v1815_v37, %v1963_v2  ;;  %v915_v11 = vmul.f32 %v1817_v38, %v1963_v2  ;;  %v818_v14 = vmul.f32 %v1835_v47, %v1963_v2 }
  0xe6   : > { %952 = vrot.lane.b32.xlu1 %v919_v28, %s1658_s15  ;;  %v1107_v28 = vmul.f32 %v1829_v44, %v1878_v19 }
  0xe7   : > { %934 = vrot.lane.b32.xlu0 %v910_v61, %s1658_s15  ;;  %v1010_v61 = vmul.f32 %v1891_v0, %v1878_v19 }
  0xea   : > { %1031 = vrot.lane.b32.xlu1 %v1007_v15, %s1659_s16  ;;  %v1109_v15 = vmul.f32 %v1829_v44, %v1963_v2 }
  0xeb   : > { %1049 = vrot.lane.b32.xlu0 %v1016_v16, %s1659_s16  ;;  %v1995_v16 = vld [vmem:[#allocation2 + $0x10] sm:$0xff] }
  0xee   : > { %663 = vrot.lane.b32.xlu1 %v629_v18, %s1655_s12  ;;  %v1012_v18 = vmul.f32 %v1891_v0, %v1963_v2 }
  0xef   : > { %1128 = vrot.lane.b32.xlu0 %v1104_v20, %s1660_s17  ;;  %v621_v20 = vmul.f32 %v1799_v29, %v1995_v16  ;;  %v815_v29 = vmul.f32 %v1811_v35, %v1995_v16  ;;  %v1009_v35 = vmul.f32 %v1821_v40, %v1995_v16  ;;  %v625_v40 = vmul.f32 %v1819_v39, %v1894_v57 }
  0xf2   : > { %742 = vrot.lane.b32.xlu1 %v717_v21, %s1656_s13  ;;  %v718_v21 = vmul.f32 %v1823_v41, %v1995_v16  ;;  %v912_v41 = vmul.f32 %v1846_v54, %v1995_v16  ;;  %v1106_v54 = vmul.f32 %v1923_v17, %v1995_v16 }
  0xf3   : > { %645 = vrot.lane.b32.xlu0 %v620_v22, %s1655_s12  ;;  %v623_v22 = vmul.f32 %v1815_v37, %v1885_v27  ;;  %v817_v37 = vmul.f32 %v1835_v47, %v1885_v27 }
  0xf6   : > { %857 = vrot.lane.b32.xlu1 %v823_v23, %s1657_s14  ;;  %v720_v23 = vmul.f32 %v1807_v33, %v1885_v27  ;;  %v914_v33 = vmul.f32 %v1817_v38, %v1885_v27  ;;  %v1011_v38 = vmul.f32 %v1891_v0, %v1885_v27  ;;  %v722_v0 = vmul.f32 %v1827_v43, %v1894_v57 }
  0xf7   : > { %760 = vrot.lane.b32.xlu0 %v726_v24, %s1656_s13  ;;  %v2013_v24 = vpop.permute.xlu1 %1097 }
  0xfa   : > { %936 = vrot.lane.b32.xlu1 %v911_v25, %s1658_s15 }
  0xfb   : > { %839 = vrot.lane.b32.xlu0 %v814_v26, %s1657_s14  ;;  %v2025_v25 = vpop.permute.xlu1 %1101  ;;  %v1108_v26 = vmul.f32 %v1829_v44, %v1885_v27 }
  0xfe   : > { %1051 = vrot.lane.b32.xlu1 %v1017_v48, %s1659_s16  ;;  %v2041_v48 = vld [vmem:[#allocation2 + $0x58] sm:$0xff] }
  0xff   : > { %954 = vrot.lane.b32.xlu0 %v920_v55, %s1658_s15  ;;  %v2035_v47 = vpop.permute.xlu1 %1190  ;;  %v630_v17 = vmul.f32 %v1803_v31, %v2041_v48  ;;  %v727_v44 = vmul.f32 %v1831_v45, %v2041_v48  ;;  %v819_v31 = vmul.f32 %v1839_v50, %v1894_v57  ;;  %v921_v45 = vmul.f32 %v1871_v12, %v2041_v48 }
 0x102   : > { %1130 = vrot.lane.b32.xlu1 %v1105_v59, %s1660_s17 }
 0x103   : > { %1033 = vrot.lane.b32.xlu0 %v1008_v58, %s1659_s16  ;;  %v2049_v55 = vpop.permute.xlu1 %1194  ;;  %v824_v58 = vmul.f32 %v1813_v36, %v2041_v48  ;;  %v1013_v36 = vmul.f32 %v1913_v7, %v1894_v57 }
 0x106   : > { %746 = vrot.lane.b32.xlu1 %v719_v63, %s1656_s13  ;;  %v916_v63 = vmul.f32 %v1854_v60, %v1894_v57 }
 0x107   : > { %649 = vrot.lane.b32.xlu0 %v622_v3, %s1655_s12  ;;  %v2059_v59 = vpop.permute.xlu1 %1283 }
 0x10a   : > { %750 = vrot.lane.b32.xlu1 %v721_v5, %s1656_s13  ;;  %v2074_v5 = vpop.permute.xlu0 %573 }
 0x10b   : > { %653 = vrot.lane.b32.xlu0 %v624_v30, %s1655_s12  ;;  %v2071_v3 = vpop.permute.xlu1 %1291  ;;  %v2079_v30 = vld [vmem:[#allocation2 + $0x40] sm:$0xff] }
 0x10e   : > { %940 = vrot.lane.b32.xlu1 %v913_v6, %s1658_s15  ;;  %v1018_v6 = vmul.f32 %v1825_v42, %v2041_v48  ;;  %v723_v42 = vmul.f32 %v1827_v43, %v1902_v10 }
 0x10f   : > { %843 = vrot.lane.b32.xlu0 %v816_v8, %s1657_s14  ;;  %v2085_v12 = vpop.permute.xlu1 %1295  ;;  %v627_v8 = vmul.f32 %v1819_v39, %v2079_v30 }
 0x112   : > { %944 = vrot.lane.b32.xlu1 %v915_v11, %s1658_s15  ;;  %v2089_v11 = vpop.permute.xlu0 %583 }
 0x113   : > { %847 = vrot.lane.b32.xlu0 %v818_v14, %s1657_s14  ;;  %v626_v14 = vmul.f32 %v1819_v39, %v1902_v10  ;;  %v821_v39 = vmul.f32 %v1839_v50, %v2079_v30 }
 0x116   : > { %1134 = vrot.lane.b32.xlu1 %v1107_v28, %s1660_s17 }
 0x117   : > { %1037 = vrot.lane.b32.xlu0 %v1010_v61, %s1659_s16 }
 0x11a   : > { %1138 = vrot.lane.b32.xlu1 %v1109_v15, %s1660_s17  ;;  %v724_v15 = vmul.f32 %v1827_v43, %v2079_v30  ;;  %v917_v43 = vmul.f32 %v1854_v60, %v1902_v10 }
 0x11b   : > { %1041 = vrot.lane.b32.xlu0 %v1012_v18, %s1659_s16 }
 0x11e   : > { %647 = vrot.lane.b32.xlu1 %v621_v20, %s1655_s12 }
 0x11f   : > { %744 = vrot.lane.b32.xlu0 %v718_v21, %s1656_s13  ;;  %v820_v21 = vmul.f32 %v1839_v50, %v1902_v10  ;;  %v1015_v50 = vmul.f32 %v1913_v7, %v2079_v30 }
 0x122   : > { %651 = vrot.lane.b32.xlu1 %v623_v22, %s1655_s12 }
 0x123   : > { %748 = vrot.lane.b32.xlu0 %v720_v23, %s1656_s13 }
 0x126   : > { %841 = vrot.lane.b32.xlu1 %v815_v29, %s1657_s14  ;;  %v918_v29 = vmul.f32 %v1854_v60, %v2079_v30  ;;  %v1111_v60 = vmul.f32 %v2013_v24, %v1902_v10 }
 0x127   : > { %938 = vrot.lane.b32.xlu0 %v912_v41, %s1658_s15 }
 0x12a   : > { %845 = vrot.lane.b32.xlu1 %v817_v37, %s1657_s14 }
 0x12b   : > { %942 = vrot.lane.b32.xlu0 %v914_v33, %s1658_s15  ;;  %v1014_v33 = vmul.f32 %v1913_v7, %v1902_v10  ;;  %v1113_v7 = vmul.f32 %v2025_v25, %v1862_v4 }
 0x12e   : > { %1035 = vrot.lane.b32.xlu1 %v1009_v35, %s1659_s16 }
 0x12f   : > { %1132 = vrot.lane.b32.xlu0 %v1106_v54, %s1660_s17 }
 0x132   : > { %1039 = vrot.lane.b32.xlu1 %v1011_v38, %s1659_s16  ;;  %v1110_v38 = vmul.f32 %v2013_v24, %v1894_v57 }
 0x133   : > { %1136 = vrot.lane.b32.xlu0 %v1108_v26, %s1660_s17 }
 0x136   : > { %655 = vrot.lane.b32.xlu1 %v625_v40, %s1655_s12 }
 0x137   : > { %665 = vrot.lane.b32.xlu0 %v630_v17, %s1655_s12  ;;  %v1112_v17 = vmul.f32 %v2013_v24, %v2079_v30 }
 0x13a   : > { %762 = vrot.lane.b32.xlu1 %v727_v44, %s1656_s13 }
 0x13b   : > { %752 = vrot.lane.b32.xlu0 %v722_v0, %s1656_s13  ;;  %v1115_v0 = vmul.f32 %v2025_v25, %v2041_v48 }
 0x13e   : > { %849 = vrot.lane.b32.xlu1 %v819_v31, %s1657_s14 }
 0x13f   : > { %859 = vrot.lane.b32.xlu0 %v824_v58, %s1657_s14  ;;  %v591_v58 = vmul.f32 %v2074_v5, %v1860_v1 }
 0x142   : > { %956 = vrot.lane.b32.xlu1 %v921_v45, %s1658_s15  ;;  %v1114_v45 = vmul.f32 %v2025_v25, %v1873_v13  ;;  %v1202_v25 = vmul.f32 %v1833_v46, %v1867_v9 }
 0x143   : > { %946 = vrot.lane.b32.xlu0 %v916_v63, %s1658_s15 }
 0x146   : > { %1043 = vrot.lane.b32.xlu1 %v1013_v36, %s1659_s16  ;;  %v600_v36 = vmul.f32 %v1809_v34, %v1862_v4 }
 0x147   : > { %1053 = vrot.lane.b32.xlu0 %v1018_v6, %s1659_s16 }
 0x14a   : > { %659 = vrot.lane.b32.xlu1 %v627_v8, %s1655_s12 }
 0x14b   : > { %657 = vrot.lane.b32.xlu0 %v626_v14, %s1655_s12 }
 0x14c   : > { %v644_v28 = vpop.permute.xlu1 %643 }
 0x14d   : > { %v662_v61 = vpop.permute.xlu0 %661 }
 0x14e   : > { %754 = vrot.lane.b32.xlu1 %v723_v42, %s1656_s13 }
 0x14f   : > { %756 = vrot.lane.b32.xlu0 %v724_v15, %s1656_s13 }
 0x150   : > { %v759_v18 = vpop.permute.xlu1 %758 }
 0x151   : > { %v741_v20 = vpop.permute.xlu0 %740 }
 0x152   : > { %853 = vrot.lane.b32.xlu1 %v821_v39, %s1657_s14 }
 0x153   : > { %851 = vrot.lane.b32.xlu0 %v820_v21, %s1657_s14  ;;  %v1204_v21 = vmul.f32 %v2035_v47, %v1878_v19  ;;  %s2456_s14 = scalar_lea.vmem %s2484_s7, %s1729_s11 }
 0x154   : > { %v838_v22 = vpop.permute.xlu1 %837 }
 0x155   : > { %v856_v23 = vpop.permute.xlu0 %855 }
 0x156   : > { %948 = vrot.lane.b32.xlu1 %v917_v43, %s1658_s15 }
 0x157   : > { %950 = vrot.lane.b32.xlu0 %v918_v29, %s1658_s15 }
 0x158   : > { %v2113_v41 = vpop.permute.xlu1 %952 }
 0x159   : > { %v935_v37 = vpop.permute.xlu0 %934 }
 0x15a   : > { %1047 = vrot.lane.b32.xlu1 %v1015_v50, %s1659_s16 }
 0x15b   : > { %1045 = vrot.lane.b32.xlu0 %v1014_v33, %s1659_s16 }
 0x15c   : > { %v2121_v35 = vpop.permute.xlu1 %1031 }
 0x15d   : > { %v1050_v54 = vpop.permute.xlu0 %1049 }
 0x15e   : > { %1142 = vrot.lane.b32.xlu1 %v1111_v60, %s1660_s17  ;;  %v1203_v60 = vmul.f32 %v1833_v46, %v1995_v16 }
 0x15f   : > { %1140 = vrot.lane.b32.xlu0 %v1110_v38, %s1660_s17 }
 0x160   : > { %v2131_v26 = vpop.permute.xlu1 %663 }
 0x161   : > { %v1129_v40 = vpop.permute.xlu0 %1128  ;;  %v674_v24 = vsel %vm667_vm2, %v662_v61, %v2131_v26 }
 0x162   : > { %1146 = vrot.lane.b32.xlu1 %v1113_v7, %s1660_s17  ;;  %v697_v42 = vadd.f32 %v674_v24, %v600_v36 }
 0x163   : > { %1144 = vrot.lane.b32.xlu0 %v1112_v17, %s1660_s17 }
 0x164   : > { %v2137_v44 = vpop.permute.xlu1 %742 }
 0x165   : > { %v2141_v31 = vpop.permute.xlu0 %645  ;;  %v765_v8 = vsel %vm764_vm3, %v741_v20, %v2137_v44 }
 0x166   : > { %v668_v63 = vsel %vm667_vm2, %v644_v28, %v2141_v31  ;;  %1150 = vrot.lane.b32.xlu1 %v1115_v0, %s1660_s17  ;;  %v1201_v28 = vmul.f32 %v1833_v46, %v1860_v1  ;;  %v1205_v46 = vmul.f32 %v2035_v47, %v1885_v27 }
 0x167   : > { %v688_v6 = vadd.f32 %v668_v63, %v591_v58  ;;  %1148 = vrot.lane.b32.xlu0 %v1114_v45, %s1660_s17  ;;  %v1208_v63 = vmul.f32 %v2049_v55, %v1902_v10 }
 0x168   : > { %v2157_v14 = vpop.permute.xlu1 %857 }
 0x169   : > { %v785_v61 = vadd.f32 %v765_v8, %v688_v6  ;;  %v2161_v15 = vpop.permute.xlu0 %760  ;;  %v868_v43 = vsel %vm861_vm4, %v856_v23, %v2157_v14  ;;  %v1206_v23 = vmul.f32 %v2035_v47, %v1963_v2  ;;  %v1207_v47 = vmul.f32 %v2049_v55, %v1894_v57 }
 0x16a   : > { %v771_v39 = vsel %vm764_vm3, %v759_v18, %v2161_v15  ;;  %1227 = vrot.lane.b32.xlu1 %v1202_v25, %s1661_s18 }
 0x16b   : > { %v794_v20 = vadd.f32 %v771_v39, %v697_v42  ;;  %1225 = vrot.lane.b32.xlu0 %v1201_v28, %s1661_s18  ;;  %v1210_v42 = vmul.f32 %v1837_v49, %v1862_v4 }
 0x16c   : > { %v2173_v29 = vpop.permute.xlu1 %936 }
 0x16d   : > { %v891_v50 = vadd.f32 %v868_v43, %v794_v20  ;;  %v2175_v33 = vpop.permute.xlu0 %839  ;;  %v959_v18 = vsel %vm958_vm5, %v935_v37, %v2173_v29  ;;  %v1212_v20 = vmul.f32 %v1837_v49, %v2041_v48  ;;  %v1211_v43 = vmul.f32 %v1837_v49, %v1873_v13  ;;  %v1382_v49 = vld [vmem:[%s2481_s4 + $0x10] sm:$0xff] }
 0x16e   : > { %v862_v38 = vsel %vm861_vm4, %v838_v22, %v2175_v33  ;;  %1231 = vrot.lane.b32.xlu1 %v1204_v21, %s1661_s18 }
 0x16f   : > { %v882_v7 = vadd.f32 %v862_v38, %v785_v61  ;;  %1229 = vrot.lane.b32.xlu0 %v1203_v60, %s1661_s18  ;;  %v1380_v38 = vld [vmem:[%s2481_s4] sm:$0xff] }
 0x170   : > { %v2187_v17 = vpop.permute.xlu1 %1051 }
 0x171   : > { %v979_v0 = vadd.f32 %v959_v18, %v882_v7  ;;  %v2189_v58 = vpop.permute.xlu0 %954  ;;  %v1062_v45 = vsel %vm1055_vm6, %v1050_v54, %v2187_v17 }
 0x172   : > { %v965_v22 = vsel %vm958_vm5, %v2113_v41, %v2189_v58  ;;  %1235 = vrot.lane.b32.xlu1 %v1206_v23, %s1661_s18 }
 0x173   : > { %v988_v37 = vadd.f32 %v965_v22, %v891_v50  ;;  %1233 = vrot.lane.b32.xlu0 %v1205_v46, %s1661_s18 }
 0x174   : > { %v2200_v24 = vpop.permute.xlu1 %1130 }
 0x175   : > { %v2206_v36 = vadd.f32 %v1062_v45, %v988_v37  ;;  %v2208_v41 = vpop.permute.xlu0 %1033  ;;  %v1153_v6 = vsel %vm1152_vm7, %v1129_v40, %v2200_v24  ;;  %v1209_v40 = vmul.f32 %v2049_v55, %v2079_v30  ;;  %v1381_v55 = vld [vmem:[%s2481_s4 + $0x8] sm:$0xff]  ;;  %v1298_v37 = vmul.f32 %v2059_v59, %v1860_v1 }
 0x176   : > { %v1056_v8 = vsel %vm1055_vm6, %v2121_v35, %v2208_v41  ;;  %1239 = vrot.lane.b32.xlu1 %v1208_v63, %s1661_s18  ;;  %v596_v35 = vmul.f32 %v1805_v32, %v1963_v2 }
 0x177   : > { %v1076_v54 = vadd.f32 %v1056_v8, %v979_v0  ;;  %1237 = vrot.lane.b32.xlu0 %v1207_v47, %s1661_s18  ;;  %v1383_v0 = vld [vmem:[%s2481_s4 + $0x18] sm:$0xff]  ;;  %v1299_v47 = vmul.f32 %v2059_v59, %v1867_v9  ;;  %v1300_v8 = vmul.f32 %v2059_v59, %v1995_v16  ;;  %v592_v59 = vmul.f32 %v2074_v5, %v1867_v9 }
 0x178   : > { %v2217_v25 = vpop.permute.xlu1 %746 }
 0x179   : > { %v2221_v61 = vadd.f32 %v1153_v6, %v1076_v54  ;;  %v2223_v28 = vpop.permute.xlu0 %649 }
 0x17a   : > { %1243 = vrot.lane.b32.xlu1 %v1210_v42, %s1661_s18  ;;  %v1301_v42 = vmul.f32 %v1843_v52, %v1878_v19 }
 0x17b   : > { %1241 = vrot.lane.b32.xlu0 %v1209_v40, %s1661_s18 }
 0x17c   : > { %v751_v39 = vpop.permute.xlu1 %750 }
 0x17d   : > { %v654_v21 = vpop.permute.xlu0 %653 }
 0x17e   : > { %v693_v50 = vadd.f32 %v654_v21, %v596_v35  ;;  %1247 = vrot.lane.b32.xlu1 %v1212_v20, %s1661_s18  ;;  %v593_v35 = vmul.f32 %v2074_v5, %v1995_v16  ;;  %v1304_v5 = vmul.f32 %v2071_v3, %v1894_v57 }
 0x17f   : > { %1245 = vrot.lane.b32.xlu0 %v1211_v43, %s1661_s18 }
 0x180   : > { %v790_v18 = vadd.f32 %v751_v39, %v693_v50  ;;  %v2240_v60 = vpop.permute.xlu1 %940  ;;  %v1302_v50 = vmul.f32 %v1843_v52, %v1885_v27 }
 0x181   : > { %v2245_v7 = vpop.permute.xlu0 %843 }
 0x182   : > { %1391 = vperm.xlu1 %1636, %v1381_v55  }
 0x183   : > { %1386 = vperm.xlu0 %1635, %v1380_v38  }
 0x184   : > { %v2250_v23 = vpop.permute.xlu1 %944 }
 0x185   : > { %v2255_v46 = vpop.permute.xlu0 %847 }
 0x186   : > { %v887_v22 = vadd.f32 %v2255_v46, %v790_v18  ;;  %1396 = vperm.xlu1 %1636, %v1382_v49   ;;  %v1303_v49 = vmul.f32 %v1843_v52, %v1963_v2  ;;  %v1305_v2 = vmul.f32 %v2071_v3, %v1902_v10 }
 0x187   : > { %1401 = vperm.xlu0 %1635, %v1383_v0  }
 0x188   : > { %v984_v45 = vadd.f32 %v2250_v23, %v887_v22  ;;  %v2261_v63 = vpop.permute.xlu1 %1134  ;;  %v594_v22 = vmul.f32 %v1805_v32, %v1878_v19 }
 0x189   : > { %v2265_v6 = vpop.permute.xlu0 %1037 }
 0x18a   : > { %1322 = vrot.lane.b32.xlu1 %v1298_v37, %s1662_s28 }
 0x18b   : > { %1324 = vrot.lane.b32.xlu0 %v1299_v47, %s1662_s28 }
 0x18c   : > { %v2271_v54 = vpop.permute.xlu1 %1138 }
 0x18d   : > { %v2273_v1 = vpop.permute.xlu0 %1041 }
 0x18e   : > { %v1081_v40 = vadd.f32 %v2273_v1, %v984_v45  ;;  %1326 = vrot.lane.b32.xlu1 %v1300_v8, %s1662_s28 }
 0x18f   : > { %1328 = vrot.lane.b32.xlu0 %v1301_v42, %s1662_s28 }
 0x190   : > { %v2283_v20 = vadd.f32 %v2271_v54, %v1081_v40  ;;  %v648_v43 = vpop.permute.xlu1 %647 }
 0x191   : > { %v745_v55 = vpop.permute.xlu0 %744  ;;  %v669_v18 = vsel %vm667_vm2, %v2141_v31, %v648_v43  ;;  %v690_v38 = vadd.f32 %v648_v43, %v593_v35  ;;  %v595_v31 = vmul.f32 %v1805_v32, %v1885_v27  ;;  %v1306_v32 = vmul.f32 %v2071_v3, %v2079_v30  ;;  %v1379_v3 = vld [vmem:[%s2482_s5] sm:$0x7] }
 0x192   : > { %v766_v16 = vsel %vm764_vm3, %v2137_v44, %v745_v55  ;;  %v689_v0 = vadd.f32 %v669_v18, %v592_v59  ;;  %1330 = vrot.lane.b32.xlu1 %v1302_v50, %s1662_s28 }
 0x193   : > { %1332 = vrot.lane.b32.xlu0 %v1303_v49, %s1662_s28  ;;  %v787_v9 = vadd.f32 %v745_v55, %v690_v38 }
 0x194   : > { %v652_v37 = vpop.permute.xlu1 %651  ;;  %v786_v52 = vadd.f32 %v766_v16, %v689_v0  ;;  %v1420_v0 = vrot.slane %v1379_v3, %v330_v53 }
 0x195   : > { %v749_v44 = vpop.permute.xlu0 %748  ;;  %v670_v45 = vsel %vm667_vm2, %v2223_v28, %v652_v37  ;;  %v671_v47 = vsel %vm667_vm2, %v652_v37, %v654_v21  ;;  %v1307_v28 = vmul.f32 %v2085_v12, %v1862_v4  ;;  %v1308_v4 = vmul.f32 %v2085_v12, %v1873_v13 }
 0x196   : > { %v767_v8 = vsel %vm764_vm3, %v2217_v25, %v749_v44  ;;  %v768_v42 = vsel %vm764_vm3, %v749_v44, %v751_v39  ;;  %v691_v19 = vadd.f32 %v670_v45, %v594_v22  ;;  %v692_v40 = vadd.f32 %v671_v47, %v595_v31  ;;  %1334 = vrot.lane.b32.xlu1 %v1304_v5, %s1662_s28 }
 0x197   : > { %1336 = vrot.lane.b32.xlu0 %v1305_v2, %s1662_s28  ;;  %v1428_v44 = vrot.slane %v1379_v3, %v338_v62 }
 0x198   : > { %v842_v27 = vpop.permute.xlu1 %841  ;;  %v788_v35 = vadd.f32 %v767_v8, %v691_v19  ;;  %v789_v59 = vadd.f32 %v768_v42, %v692_v40  ;;  %v602_v40 = vmul.f32 %v1809_v34, %v2041_v48 }
 0x199   : > { %v939_v21 = vpop.permute.xlu0 %938  ;;  %v863_v25 = vsel %vm861_vm4, %v2175_v33, %v842_v27  ;;  %v884_v39 = vadd.f32 %v842_v27, %v787_v9  ;;  %v1309_v33 = vmul.f32 %v2085_v12, %v2041_v48  ;;  %v1424_v12 = vrot.slane %v1379_v3, %v334_v56 }
 0x19a   : > { %v960_v43 = vsel %vm958_vm5, %v2173_v29, %v939_v21  ;;  %v883_v50 = vadd.f32 %v863_v25, %v786_v52  ;;  %1338 = vrot.lane.b32.xlu1 %v1306_v32, %s1662_s28 }
 0x19b   : > { %1340 = vrot.lane.b32.xlu0 %v1307_v28, %s1662_s28  ;;  %v981_v55 = vadd.f32 %v939_v21, %v884_v39 }
 0x19c   : > { %v846_v18 = vpop.permute.xlu1 %845  ;;  %v980_v38 = vadd.f32 %v960_v43, %v883_v50 }
 0x19d   : > { %v943_v49 = vpop.permute.xlu0 %942  ;;  %v864_v29 = vsel %vm861_vm4, %v2245_v7, %v846_v18  ;;  %v865_v16 = vsel %vm861_vm4, %v846_v18, %v2255_v46 }
 0x19e   : > { %v961_v9 = vsel %vm958_vm5, %v2240_v60, %v943_v49  ;;  %v962_v5 = vsel %vm958_vm5, %v943_v49, %v2250_v23  ;;  %v885_v22 = vadd.f32 %v864_v29, %v788_v35  ;;  %v886_v31 = vadd.f32 %v865_v16, %v789_v59  ;;  %1342 = vrot.lane.b32.xlu1 %v1308_v4, %s1662_s28 }
 0x19f   : > { %1344 = vrot.lane.b32.xlu0 %v1309_v33, %s1662_s28 }
 0x1a0   : > { %v1036_v7 = vpop.permute.xlu1 %1035  ;;  %v982_v46 = vadd.f32 %v961_v9, %v885_v22  ;;  %v983_v37 = vadd.f32 %v962_v5, %v886_v31  ;;  %v597_v9 = vmul.f32 %v2089_v11, %v1894_v57 }
 0x1a1   : > { %v1133_v52 = vpop.permute.xlu0 %1132  ;;  %v1057_v53 = vsel %vm1055_vm6, %v2208_v41, %v1036_v7  ;;  %v1078_v60 = vadd.f32 %v1036_v7, %v981_v55 }
 0x1a2   : > { %v1154_v23 = vsel %vm1152_vm7, %v2200_v24, %v1133_v52  ;;  %v1077_v2 = vadd.f32 %v1057_v53, %v980_v38  ;;  %1429 = vrot.lane.b32.xlu1 %v1420_v0, %s1658_s15 }
 0x1a3   : > { %1431 = vrot.lane.b32.xlu0 %v1424_v12, %s1658_s15  ;;  %v2352_v56 = vadd.f32 %v1133_v52, %v1078_v60 }
 0x1a4   : > { %v1040_v45 = vpop.permute.xlu1 %1039  ;;  %v2354_v47 = vadd.f32 %v1154_v23, %v1077_v2 }
 0x1a5   : > { %v1137_v8 = vpop.permute.xlu0 %1136  ;;  %v1058_v41 = vsel %vm1055_vm6, %v2265_v6, %v1040_v45  ;;  %v1059_v24 = vsel %vm1055_vm6, %v1040_v45, %v2273_v1  ;;  %v601_v1 = vmul.f32 %v1809_v34, %v1873_v13 }
 0x1a6   : > { %v1155_v42 = vsel %vm1152_vm7, %v2261_v63, %v1137_v8  ;;  %v1156_v51 = vsel %vm1152_vm7, %v1137_v8, %v2271_v54  ;;  %v1079_v62 = vadd.f32 %v1058_v41, %v982_v46  ;;  %v1080_v19 = vadd.f32 %v1059_v24, %v983_v37  ;;  %1433 = vrot.lane.b32.xlu1 %v1428_v44, %s1658_s15 }
 0x1a8   : > { %v656_v32 = vpop.permute.xlu1 %655  ;;  %v2367_v27 = vadd.f32 %v1155_v42, %v1079_v62  ;;  %v2369_v6 = vadd.f32 %v1156_v51, %v1080_v19 }
 0x1a9   : > { %v666_v35 = vpop.permute.xlu0 %665 }
 0x1aa   : > { %v675_v63 = vsel %vm667_vm2, %v2131_v26, %v666_v35  ;;  %v699_v54 = vadd.f32 %v666_v35, %v602_v40 }
 0x1ab   : > { %v698_v59 = vadd.f32 %v675_v63, %v601_v1 }
 0x1ac   : > { %v763_v28 = vpop.permute.xlu1 %762 }
 0x1ad   : > { %v753_v21 = vpop.permute.xlu0 %752  ;;  %v772_v25 = vsel %vm764_vm3, %v2161_v15, %v763_v28  ;;  %v796_v48 = vadd.f32 %v763_v28, %v699_v54 }
 0x1ae   : > { %v795_v39 = vadd.f32 %v772_v25, %v698_v59 }
 0x1b0   : > { %v850_v43 = vpop.permute.xlu1 %849 }
 0x1b1   : > { %v860_v50 = vpop.permute.xlu0 %859 }
 0x1b2   : > { %v869_v3 = vsel %vm861_vm4, %v2157_v14, %v860_v50  ;;  %v893_v55 = vadd.f32 %v860_v50, %v796_v48  ;;  %v599_v14 = vmul.f32 %v2089_v11, %v2079_v30 }
 0x1b3   : > { %v892_v34 = vadd.f32 %v869_v3, %v795_v39 }
 0x1b4   : > { %v957_v13 = vpop.permute.xlu1 %956 }
 0x1b5   : > { %v947_v4 = vpop.permute.xlu0 %946  ;;  %v966_v26 = vsel %vm958_vm5, %v2189_v58, %v957_v13  ;;  %v990_v18 = vadd.f32 %v957_v13, %v893_v55  ;;  %v598_v58 = vmul.f32 %v2089_v11, %v1902_v10 }
 0x1b6   : > { %v989_v38 = vadd.f32 %v966_v26, %v892_v34 }
 0x1b8   : > { %v1044_v33 = vpop.permute.xlu1 %1043 }
 0x1b9   : > { %v1054_v49 = vpop.permute.xlu0 %1053 }
 0x1ba   : > { %v1063_v15 = vsel %vm1055_vm6, %v2187_v17, %v1054_v49  ;;  %v2383_v29 = vadd.f32 %v1054_v49, %v990_v18 }
 0x1bb   : > { %v2385_v16 = vadd.f32 %v1063_v15, %v989_v38 }
 0x1bc   : > { %v660_v0 = vpop.permute.xlu1 %659 }
 0x1bd   : > { %v658_v5 = vpop.permute.xlu0 %657  ;;  %v696_v22 = vadd.f32 %v660_v0, %v599_v14 }
 0x1be   : > { %v672_v31 = vsel %vm667_vm2, %v656_v32, %v658_v5  ;;  %v673_v17 = vsel %vm667_vm2, %v658_v5, %v660_v0 }
 0x1bf   : > { %v694_v12 = vadd.f32 %v672_v31, %v597_v9  ;;  %v695_v7 = vadd.f32 %v673_v17, %v598_v58 }
 0x1c0   : > { %v755_v46 = vpop.permute.xlu1 %754 }
 0x1c1   : > { %v757_v37 = vpop.permute.xlu0 %756  ;;  %v769_v52 = vsel %vm764_vm3, %v753_v21, %v755_v46 }
 0x1c2   : > { %v793_v30 = vadd.f32 %v757_v37, %v696_v22  ;;  %v770_v53 = vsel %vm764_vm3, %v755_v46, %v757_v37  ;;  %v791_v60 = vadd.f32 %v769_v52, %v694_v12 }
 0x1c3   : > { %v792_v57 = vadd.f32 %v770_v53, %v695_v7 }
 0x1c4   : > { %v854_v23 = vpop.permute.xlu1 %853 }
 0x1c5   : > { %v852_v2 = vpop.permute.xlu0 %851  ;;  %v890_v44 = vadd.f32 %v854_v23, %v793_v30 }
 0x1c6   : > { %v866_v10 = vsel %vm861_vm4, %v850_v43, %v852_v2  ;;  %v867_v11 = vsel %vm861_vm4, %v852_v2, %v854_v23 }
 0x1c7   : > { %v888_v45 = vadd.f32 %v866_v10, %v791_v60  ;;  %v889_v8 = vadd.f32 %v867_v11, %v792_v57 }
 0x1c8   : > { %v949_v41 = vpop.permute.xlu1 %948 }
 0x1c9   : > { %v951_v24 = vpop.permute.xlu0 %950  ;;  %v963_v42 = vsel %vm958_vm5, %v947_v4, %v949_v41 }
 0x1ca   : > { %v987_v51 = vadd.f32 %v951_v24, %v890_v44  ;;  %v964_v62 = vsel %vm958_vm5, %v949_v41, %v951_v24  ;;  %v985_v19 = vadd.f32 %v963_v42, %v888_v45 }
 0x1cb   : > { %v986_v40 = vadd.f32 %v964_v62, %v889_v8 }
 0x1cc   : > { %v1048_v32 = vpop.permute.xlu1 %1047 }
 0x1cd   : > { %v1046_v1 = vpop.permute.xlu0 %1045  ;;  %v1084_v35 = vadd.f32 %v1048_v32, %v987_v51 }
 0x1ce   : > { %v1060_v63 = vsel %vm1055_vm6, %v1044_v33, %v1046_v1  ;;  %v1061_v54 = vsel %vm1055_vm6, %v1046_v1, %v1048_v32 }
 0x1cf   : > { %v1082_v59 = vadd.f32 %v1060_v63, %v985_v19  ;;  %v1083_v28 = vadd.f32 %v1061_v54, %v986_v40 }
 0x1d0   : > { %v1143_v21 = vpop.permute.xlu1 %1142 }
 0x1d1   : > { %v1141_v25 = vpop.permute.xlu0 %1140 }
 0x1d2   : > { %v1157_v30 = vsel %vm1152_vm7, %v1141_v25, %v1143_v21 }
 0x1d3   : > { %v1179_v44 = vadd.f32 %v1157_v30, %v1082_v59 }
 0x1d4   : > { %v1147_v48 = vpop.permute.xlu1 %1146 }
 0x1d5   : > { %v1145_v39 = vpop.permute.xlu0 %1144 }
 0x1d6   : > { %v1158_v43 = vsel %vm1152_vm7, %v1143_v21, %v1145_v39  ;;  %v1181_v10 = vadd.f32 %v1145_v39, %v1084_v35 }
 0x1d7   : > { %v1180_v50 = vadd.f32 %v1158_v43, %v1083_v28 }
 0x1d8   : > { %v1151_v3 = vpop.permute.xlu1 %1150 }
 0x1d9   : > { %v1149_v55 = vpop.permute.xlu0 %1148  ;;  %v1184_v11 = vadd.f32 %v1151_v3, %v2383_v29 }
 0x1da   : > { %v1159_v53 = vsel %vm1152_vm7, %v1147_v48, %v1149_v55  ;;  %v1160_v60 = vsel %vm1152_vm7, %v1149_v55, %v1151_v3 }
 0x1db   : > { %v1182_v8 = vadd.f32 %v1159_v53, %v2206_v36  ;;  %v1183_v41 = vadd.f32 %v1160_v60, %v2385_v16 }
 0x1dc   : > { %v1228_v34 = vpop.permute.xlu1 %1227 }
 0x1dd   : > { %v1226_v13 = vpop.permute.xlu0 %1225 }
 0x1de   : > { %v1250_v57 = vsel %vm1249_vm8, %v1226_v13, %v1228_v34 }
 0x1df   : > { %v1270_v51 = vadd.f32 %v1250_v57, %v2221_v61 }
 0x1e0   : > { %v1232_v4 = vpop.permute.xlu1 %1231 }
 0x1e1   : > { %v1230_v26 = vpop.permute.xlu0 %1229 }
 0x1e2   : > { %v1251_v23 = vsel %vm1249_vm8, %v1228_v34, %v1230_v26  ;;  %v1272_v19 = vadd.f32 %v1230_v26, %v2352_v56 }
 0x1e3   : > { %v1271_v62 = vadd.f32 %v1251_v23, %v2354_v47 }
 0x1e4   : > { %v1236_v18 = vpop.permute.xlu1 %1235 }
 0x1e5   : > { %v1234_v38 = vpop.permute.xlu0 %1233  ;;  %v1275_v29 = vadd.f32 %v1236_v18, %v2283_v20 }
 0x1e6   : > { %v1252_v24 = vsel %vm1249_vm8, %v1232_v4, %v1234_v38  ;;  %v1253_v42 = vsel %vm1249_vm8, %v1234_v38, %v1236_v18 }
 0x1e7   : > { %v1273_v35 = vadd.f32 %v1252_v24, %v2367_v27  ;;  %v1274_v63 = vadd.f32 %v1253_v42, %v2369_v6 }
 0x1e8   : > { %v1240_v33 = vpop.permute.xlu1 %1239 }
 0x1e9   : > { %v1238_v49 = vpop.permute.xlu0 %1237 }
 0x1ea   : > { %v1254_v40 = vsel %vm1249_vm8, %v1238_v49, %v1240_v33 }
 0x1eb   : > { %v1276_v54 = vadd.f32 %v1254_v40, %v1179_v44 }
 0x1ec   : > { %v1244_v15 = vpop.permute.xlu1 %1243 }
 0x1ed   : > { %v1242_v14 = vpop.permute.xlu0 %1241 }
 0x1ee   : > { %v1255_v32 = vsel %vm1249_vm8, %v1240_v33, %v1242_v14  ;;  %v1278_v59 = vadd.f32 %v1242_v14, %v1181_v10 }
 0x1ef   : > { %v1277_v21 = vadd.f32 %v1255_v32, %v1180_v50 }
 0x1f0   : > { %v1248_v0 = vpop.permute.xlu1 %1247 }
 0x1f1   : > { %v1246_v9 = vpop.permute.xlu0 %1245  ;;  %v1281_v39 = vadd.f32 %v1248_v0, %v1184_v11 }
 0x1f2   : > { %v1256_v36 = vsel %vm1249_vm8, %v1244_v15, %v1246_v9  ;;  %v1257_v16 = vsel %vm1249_vm8, %v1246_v9, %v1248_v0 }
 0x1f3   : > { %v1279_v25 = vadd.f32 %v1256_v36, %v1182_v8  ;;  %v1280_v48 = vadd.f32 %v1257_v16, %v1183_v41 }
 0x1fd   : > { %v2404_v5 = vpop.permute.xlu1 %1391 }
 0x1fe   : > { %v2406_v58 = vpop.permute.xlu0 %1386 }
 0x201   : > { %v2408_v22 = vpop.permute.xlu1 %1396 }
 0x202   : > { %v2410_v31 = vpop.permute.xlu0 %1401 }
 0x205   : > { %v1323_v17 = vpop.permute.xlu1 %1322 }
 0x206   : > { %v1325_v12 = vpop.permute.xlu0 %1324 }
 0x207   : > { %v1347_v61 = vsel %vm1346_vm9, %v1323_v17, %v1325_v12 }
 0x208   : > { %v1367_v43 = vadd.f32 %v1347_v61, %v1270_v51 }
 0x209   : > { %v1327_v7 = vpop.permute.xlu1 %1326 }
 0x20a   : > { %v1329_v46 = vpop.permute.xlu0 %1328  ;;  %v1348_v47 = vsel %vm1346_vm9, %v1325_v12, %v1327_v7  ;;  %v1369_v27 = vadd.f32 %v1327_v7, %v1272_v19  ;;  %v1404_v7 = vadd.f32 %v2406_v58, %v1367_v43 }
 0x20b   : > { %v1368_v3 = vadd.f32 %v1348_v47, %v1271_v62 }
 0x20d   : > { %v1331_v37 = vpop.permute.xlu1 %1330  ;;  %v1405_v53 = vadd.f32 %v2406_v58, %v1368_v3 }
 0x20e   : > { %v1333_v52 = vpop.permute.xlu0 %1332  ;;  %v1349_v20 = vsel %vm1346_vm9, %v1329_v46, %v1331_v37  ;;  %v1406_v46 = vadd.f32 %v2406_v58, %v1369_v27 }
 0x20f   : > { %v1350_v6 = vsel %vm1346_vm9, %v1331_v37, %v1333_v52  ;;  %v1370_v34 = vadd.f32 %v1349_v20, %v1273_v35  ;;  %v1372_v38 = vadd.f32 %v1333_v52, %v1275_v29 }
 0x210   : > { %v1371_v15 = vadd.f32 %v1350_v6, %v1274_v63 }
 0x211   : > { %v1335_v2 = vpop.permute.xlu1 %1334  ;;  %v1407_v37 = vadd.f32 %v2404_v5, %v1370_v34  ;;  %v1409_v60 = vadd.f32 %v2404_v5, %v1372_v38 }
 0x212   : > { %v1337_v45 = vpop.permute.xlu0 %1336  ;;  %v1408_v11 = vadd.f32 %v2404_v5, %v1371_v15 }
 0x213   : > { %v1351_v28 = vsel %vm1346_vm9, %v1335_v2, %v1337_v45 }
 0x214   : > { %v1373_v13 = vadd.f32 %v1351_v28, %v1276_v54 }
 0x215   : > { %v1339_v1 = vpop.permute.xlu1 %1338 }
 0x216   : > { %v1341_v56 = vpop.permute.xlu0 %1340  ;;  %v1352_v4 = vsel %vm1346_vm9, %v1337_v45, %v1339_v1  ;;  %v1375_v33 = vadd.f32 %v1339_v1, %v1278_v59  ;;  %v1410_v52 = vadd.f32 %v2408_v22, %v1373_v13 }
 0x217   : > { %v1374_v14 = vadd.f32 %v1352_v4, %v1277_v21 }
 0x218   : > { %v1412_v57 = vadd.f32 %v2408_v22, %v1375_v33 }
 0x219   : > { %v1343_v55 = vpop.permute.xlu1 %1342  ;;  %v1411_v45 = vadd.f32 %v2408_v22, %v1374_v14 }
 0x21a   : > { %v1345_v26 = vpop.permute.xlu0 %1344  ;;  %v1353_v18 = vsel %vm1346_vm9, %v1341_v56, %v1343_v55 }
 0x21b   : > { %v1354_v50 = vsel %vm1346_vm9, %v1343_v55, %v1345_v26  ;;  %v1376_v49 = vadd.f32 %v1353_v18, %v1279_v25  ;;  %v1378_v0 = vadd.f32 %v1345_v26, %v1281_v39 }
 0x21c   : > { %v1377_v9 = vadd.f32 %v1354_v50, %v1280_v48 }
 0x21d   : > { %v1413_v17 = vadd.f32 %v2410_v31, %v1376_v49  ;;  %v1430_v12 = vpop.permute.xlu1 %1429  ;;  %v1415_v8 = vadd.f32 %v2410_v31, %v1378_v0 }
 0x21e   : > { %v1432_v30 = vpop.permute.xlu0 %1431  ;;  %v1414_v41 = vadd.f32 %v2410_v31, %v1377_v9 }
 0x21f   : > { %v1435_v23 = vsel %vm958_vm5, %v1430_v12, %v1432_v30 }
 0x220   : > { %v1440_v2 = vmul.f32 %v1435_v23, %v1404_v7  ;;  %v1443_v44 = vmul.f32 %v1435_v23, %v1407_v37  ;;  %v1446_v58 = vmul.f32 %v1435_v23, %v1410_v52  ;;  %v1449_v10 = vmul.f32 %v1435_v23, %v1413_v17 }
 0x221   : > { %v1434_v24 = vpop.permute.xlu1 %1433 }
 0x222   : > { %1452 = vst [vmem:[%s286_s10] sm:$0xff] %v1440_v2  ;;  %1456 = vst [vmem:[%s286_s10 + $0x18] sm:$0xff] %v1443_v44  ;;  %v1436_v42 = vsel %vm958_vm5, %v1432_v30, %v1434_v24  ;;  %v1442_v51 = vmul.f32 %v1434_v24, %v1406_v46  ;;  %v1445_v62 = vmul.f32 %v1434_v24, %v1409_v60 }
 0x223   : > { %1459 = vst [vmem:[%s2456_s14] sm:$0xff] %v1446_v58  ;;  %1462 = vst [vmem:[%s2456_s14 + $0x18] sm:$0xff] %v1449_v10  ;;  %v1448_v5 = vmul.f32 %v1434_v24, %v1412_v57  ;;  %v1441_v19 = vmul.f32 %v1436_v42, %v1405_v53  ;;  %v1444_v22 = vmul.f32 %v1436_v42, %v1408_v11 }
 0x224   : > { %v1447_v40 = vmul.f32 %v1436_v42, %v1411_v45  ;;  %v1450_v29 = vmul.f32 %v1436_v42, %v1414_v41  ;;  %v1451_v32 = vmul.f32 %v1434_v24, %v1415_v8  ;;  %1455 = vst.msk [vmem:[%s286_s10 + $0x10] sm:$0xff] %vm1454_vm10, %v1442_v51  ;;  %1458 = vst.msk [vmem:[%s286_s10 + $0x28] sm:$0xff] %vm1454_vm10, %v1445_v62 }
 0x225   : > { %1461 = vst.msk [vmem:[%s2456_s14 + $0x10] sm:$0xff] %vm1454_vm10, %v1448_v5  ;;  %1453 = vst [vmem:[%s286_s10 + $0x8] sm:$0xff] %v1441_v19 }
 0x226   : > { %1457 = vst [vmem:[%s286_s10 + $0x20] sm:$0xff] %v1444_v22  ;;  %1460 = vst [vmem:[%s2456_s14 + $0x8] sm:$0xff] %v1447_v40 }
 0x227   : > { %1463 = vst [vmem:[%s2456_s14 + $0x20] sm:$0xff] %v1450_v29  ;;  %1464 = vst.msk [vmem:[%s2456_s14 + $0x28] sm:$0xff] %vm1454_vm10, %v1451_v32 }
 0x228 PF: > { %s18_s24 = sadd.s32 1, %s1643_s24  }
 0x229   : > { %p15_p4 = scmp.ge.s32.totalorder %s18_s24, 4  }
 0x22b   :  { %17 = sbr.rel (!%p15_p4) target bundleno = 1 (0x1), region = 86 }

// kernel: _lambda_.3
= control target key start
LH: loop header
LB: loop body
LE: loop exit
PB: predicated region body
PF: predicated region fallthrough
CT: control target
= control target key end

     0   :  { %14 = vsyncpa [#allocation4], 0  ;;  %s3434_s30 = smov 0   ;;  %s3811_s0 = inlined_call_operand.vmem [shape: f32[2], index: 0, kind: input, shape index: {}]   ;;  %s3812_s1 = inlined_call_operand.vmem [shape: f32[2,16,362], index: 1, kind: input, shape index: {}]   ;;  %s3813_s2 = inlined_call_operand.vmem [shape: f32[2,16,324], index: 2, kind: input, shape index: {}]   ;;  %s3814_s3 = inlined_call_operand.vmem [shape: f32[2,16,324], index: 3, kind: input, shape index: {}]   ;;  %s3815_s4 = inlined_call_operand.vmem [shape: f32[9,16,16], index: 4, kind: input, shape index: {}]   ;;  %s3816_s5 = inlined_call_operand.vmem [shape: f32[16,1], index: 5, kind: input, shape index: {}]   ;;  %s3817_s6 = inlined_call_operand.vmem [shape: f32[1,362], index: 6, kind: input, shape index: {}]   ;;  %s3818_s7 = inlined_call_operand.vmem [shape: f32[16,16], index: 7, kind: input, shape index: {}]   ;;  %s3819_s8 = inlined_call_operand.vmem [shape: f32[16,1], index: 8, kind: input, shape index: {}]   ;;  %s3820_s9 = inlined_call_operand.vmem [shape: f32[2,16,324], index: 9, kind: output, shape index: {}]  }
   0x1 LB: > { %s3080_s10 = sadd.s32 4294967295, %s3370_s30   ;;  %p3082_p0 = scmp.ge.s32.totalorder %s3370_s30, 1  ;;  %s3370_s30 = sphi %s3434_s30, %s20_s30  }
   0x2   : > { %p255_p1 = scmp.lt.s32.totalorder %s3370_s30, 3  ;;  %s268_s13 = sshll.u32 %s3811_s0, 4  ;;  %s269_s13 = int_to_ptr.vmem [resolvable:$true] %s268_s13 }
   0x3   : > { %p3305_p3 = scmp.eq.s32.totalorder %s3080_s10, 0  ;;  %s3345_s15 = scalar_lea.vmem %s269_s13, 16 }
   0x4   : > { %p3445_p2 = pnand %p3082_p0, %p255_p1  ;;  %p3346_p6 = scmp.ne.s32.totalorder %s269_s13, %s3345_s15 }
   0x5   : > { %p3353_p10 = scmp.lt.s32.totalorder %s269_s13, %s269_s13  ;;  %p3354_p11 = scmp.lt.s32.totalorder %s3345_s15, %s3345_s15 }
   0x6   : > { %p3301_p4 = pneg %p3445_p2 }
   0x7   : > { %p3355_p12 = por %p3354_p11, %p3353_p10 }
   0x8   : > { %p3302_p5 = pnand %p3305_p3, %p3301_p4 }
   0xa   : > { %p3347_p7 = pneg %p3302_p5 }
   0xc   : > { %p3348_p8 = pnand %p3347_p7, %p3346_p6 }
   0xe   : > { %p3349_p9 = pneg %p3348_p8 }
  0x10   : > { %p3356_p13 = pnand %p3355_p12, %p3349_p9 }
  0x12   : > { %3359 = shalt.err (!%p3356_p13)
}
  0x13   : > { %s3372_s16 = smov [#allocation3]   ;;  %320 = sbr.rel (%p3445_p2) target bundleno = 2036 (0x7f4), region = 56 }
  0x14   : > { %3304 = dma.vmem_to_smem (!%p3302_p5), %s269_s13, 16, %s3372_s16, [#allocation4]  }
  0x18   : > { %3365 = dma.done.wait (%p3305_p3), [#allocation4], 16  }
  0x19   : > { %3367 = vsyncadd (%p3305_p3), [#allocation4], 4294967280 }
  0x1a   : > { %326 = sfence }
  0x1b   : > { %p367_p0 = scmp.lt.s32.totalorder %s3080_s10, 1  ;;  %v3461_v0 = vld [vmem:[%s3815_s4 + $0x10] sm:$0xff]  ;;  %vm428_vm0 = vcmask 130048   ;;  %v3373_v1 = vmov 0.0   ;;  %s3374_s23 = smov 127   ;;  %v2094_v8 = vlaneseq  ;;  %v3382_v9 = vmov 0  }
  0x1c   : > { %499 = vmatprep.mubr.f32.mxu0 %v3373_v1  ;;  %3210 = vmatprep.mubr.msk.f32.mxu1 %vm428_vm0, %v3461_v0  ;;  %s3375_s24 = smov 126   ;;  %s3376_s25 = smov 110   ;;  %v387_v11 = vld [vmem:[%s3817_s6] sm:$0x7]  ;;  %vm417_vm1 = vcmask 1039360   ;;  %v3092_v29 = vld [vmem:[%s3815_s4 + $0x18] sm:$0xff] }
  0x1d   : > { %s3823_s10 = smov (!%p367_p0, %s3080_s10), 1  ;;  %s3377_s26 = smov 109   ;;  %3327 = vset.pattern.permute.xlu0 %v3382_v9  ;;  %3328 = vset.pattern.permute.xlu1 %v3382_v9  ;;  %v2095_v10 = vshrl.u32 %v2094_v8, 7  ;;  %v2075_v16 = vld [vmem:[%s3816_s5] sm:$0xff]  ;;  %vm760_vm2 = vcmask 1031168   ;;  %v389_v42 = vld [vmem:[%s3815_s4 + $0x8] sm:$0xff] }
  0x1e   : > { %s3456_s17 = smul.u32 48, %s3823_s10  ;;  %s3378_s27 = smov 108   ;;  %v388_v37 = vld [vmem:[%s3815_s4] sm:$0xff]  ;;  %vm2133_vm3 = vcmask 556032   ;;  %vm950_vm4 = vcmask 900096   ;;  %v3102_v54 = vld [vmem:[%s3815_s4 + $0x28] sm:$0xff] }
  0x1f   : > { %s3379_s28 = smov 92   ;;  %s3380_s29 = smov 91   ;;  %v2096_v12 = vsub.s32 0, %v2095_v10  ;;  %v2100_v14 = vsub.s32 1, %v2095_v10  ;;  %v2104_v15 = vsub.s32 2, %v2095_v10  ;;  %v3101_v50 = vld [vmem:[%s3815_s4 + $0x20] sm:$0xff] }
  0x20   : > { %s371_s22 = scalar_lea.vmem %s3812_s1, %s3456_s17  ;;  %s3381_s10 = smov 90   ;;  %v3107_v59 = vld [vmem:[%s3815_s4 + $0x30] sm:$0xff]  ;;  %v3108_v62 = vld [vmem:[%s3815_s4 + $0x38] sm:$0xff]  ;;  %vm1140_vm5 = vcmask 891904   ;;  %vm1330_vm6 = vcmask 883712   ;;  %vm1520_vm7 = vcmask 752640  }
  0x21   : > { %v3470_v2 = vld [vmem:[%s371_s22 + $0x20] sm:$0xff]  ;;  %v3472_v3 = vld [vmem:[%s371_s22 + $0x18] sm:$0xff]  ;;  %v3476_v4 = vld [vmem:[%s371_s22 + $0x28] sm:$0xff]  ;;  %v2097_v13 = vrot.slane %v387_v11, %v2096_v12  ;;  %v2101_v17 = vrot.slane %v387_v11, %v2100_v14  ;;  %v2105_v18 = vrot.slane %v387_v11, %v2104_v15  ;;  %s3553_s20 = scalar_lea.vmem %s3813_s2, %s3456_s17  ;;  %vm1710_vm8 = vcmask 744448   ;;  %s2302_s18 = sld [smem:[#allocation3]] }
  0x22   : > { %413 = vrot.lane.b32.xlu0 %v3470_v2, %s3374_s23  ;;  %411 = vrot.lane.b32.xlu1 %v3472_v3, %s3374_s23  ;;  %v3478_v5 = vld [vmem:[%s371_s22 + $0x8] sm:$0xff]  ;;  %v3482_v6 = vld [vmem:[%s371_s22 + $0x10] sm:$0xff]  ;;  %vm1900_vm9 = vcmask 736256   ;;  %vm3383_vm10 = vmmov 0   ;;  %vm2305_vm11 = vcmask 64512   ;;  %s3757_s21 = scalar_lea.vmem %s3814_s3, %s3456_s17  ;;  %s386_s13 = scalar_lea.vmem %s3820_s9, %s3456_s17 }
  0x23   : > { %v3484_v7 = vld [vmem:[%s371_s22] sm:$0xff]  ;;  %v3566_v33 = vld [vmem:[%s3553_s20 + $0x8] sm:$0xff]  ;;  %v3571_v34 = vld [vmem:[%s3553_s20 + $0x10] sm:$0xff]  ;;  %s3149_s22 = sld [smem:[#allocation3 + $0x1]] }
  0x24   : > { %v3563_v32 = vld [vmem:[%s3553_s20] sm:$0xff]  ;;  %v2141_v40 = vmul.f32 %v3566_v33, %v3566_v33  ;;  %v2142_v41 = vmul.f32 %v3571_v34, %v3571_v34  ;;  %v3114_v11 = vld [vmem:[%s3815_s4 + $0x48] sm:$0xff] }
  0x25   : > { %v2140_v39 = vmul.f32 %v3563_v32, %v3563_v32 }
  0x26   : > { %415 = vrot.lane.b32.xlu0 %v3476_v4, %s3374_s23  ;;  %407 = vrot.lane.b32.xlu1 %v3478_v5, %s3374_s23  ;;  %v2144_v49 = vsel %vm2133_vm3, %v2142_v41, 0.0 }
  0x27   : > { %v2143_v46 = vadd.f32 %v2141_v40, %v2140_v39  ;;  %v3126_v39 = vld [vmem:[%s3815_s4 + $0x68] sm:$0xff] }
  0x29   : > { %v2145_v55 = vadd.f32 %v2144_v49, %v2143_v46 }
  0x2a   : > { %409 = vrot.lane.b32.xlu0 %v3482_v6, %s3374_s23  ;;  %405 = vrot.lane.b32.xlu1 %v3484_v7, %s3374_s23 }
  0x2e   : > { %756 = vrot.lane.b32.xlu0 %v3470_v2, %s3375_s24  ;;  %758 = vrot.lane.b32.xlu1 %v3476_v4, %s3375_s24 }
  0x32   : > { %754 = vrot.lane.b32.xlu0 %v3472_v3, %s3375_s24  ;;  %750 = vrot.lane.b32.xlu1 %v3478_v5, %s3375_s24 }
  0x36   : > { %752 = vrot.lane.b32.xlu0 %v3482_v6, %s3375_s24  ;;  %748 = vrot.lane.b32.xlu1 %v3484_v7, %s3375_s24 }
  0x3a   : > { %946 = vrot.lane.b32.xlu0 %v3470_v2, %s3376_s25  ;;  %948 = vrot.lane.b32.xlu1 %v3476_v4, %s3376_s25 }
  0x3e   : > { %944 = vrot.lane.b32.xlu0 %v3472_v3, %s3376_s25  ;;  %940 = vrot.lane.b32.xlu1 %v3478_v5, %s3376_s25 }
  0x42   : > { %942 = vrot.lane.b32.xlu0 %v3482_v6, %s3376_s25  ;;  %938 = vrot.lane.b32.xlu1 %v3484_v7, %s3376_s25 }
  0x46   : > { %1136 = vrot.lane.b32.xlu0 %v3470_v2, %s3377_s26  ;;  %1138 = vrot.lane.b32.xlu1 %v3476_v4, %s3377_s26 }
  0x4a   : > { %1134 = vrot.lane.b32.xlu0 %v3472_v3, %s3377_s26  ;;  %1130 = vrot.lane.b32.xlu1 %v3478_v5, %s3377_s26 }
  0x4e   : > { %1132 = vrot.lane.b32.xlu0 %v3482_v6, %s3377_s26  ;;  %1128 = vrot.lane.b32.xlu1 %v3484_v7, %s3377_s26 }
  0x52   : > { %1326 = vrot.lane.b32.xlu0 %v3470_v2, %s3378_s27  ;;  %1328 = vrot.lane.b32.xlu1 %v3476_v4, %s3378_s27 }
  0x56   : > { %1324 = vrot.lane.b32.xlu0 %v3472_v3, %s3378_s27  ;;  %1320 = vrot.lane.b32.xlu1 %v3478_v5, %s3378_s27 }
  0x5a   : > { %1322 = vrot.lane.b32.xlu0 %v3482_v6, %s3378_s27  ;;  %1318 = vrot.lane.b32.xlu1 %v3484_v7, %s3378_s27 }
  0x5e   : > { %1516 = vrot.lane.b32.xlu0 %v3470_v2, %s3379_s28  ;;  %1518 = vrot.lane.b32.xlu1 %v3476_v4, %s3379_s28 }
  0x62   : > { %1514 = vrot.lane.b32.xlu0 %v3472_v3, %s3379_s28  ;;  %1510 = vrot.lane.b32.xlu1 %v3478_v5, %s3379_s28 }
  0x66   : > { %1512 = vrot.lane.b32.xlu0 %v3482_v6, %s3379_s28  ;;  %1508 = vrot.lane.b32.xlu1 %v3484_v7, %s3379_s28 }
  0x6a   : > { %1706 = vrot.lane.b32.xlu0 %v3470_v2, %s3380_s29  ;;  %1708 = vrot.lane.b32.xlu1 %v3476_v4, %s3380_s29 }
  0x6e   : > { %1704 = vrot.lane.b32.xlu0 %v3472_v3, %s3380_s29  ;;  %1700 = vrot.lane.b32.xlu1 %v3478_v5, %s3380_s29 }
  0x72   : > { %1702 = vrot.lane.b32.xlu0 %v3482_v6, %s3380_s29  ;;  %1698 = vrot.lane.b32.xlu1 %v3484_v7, %s3380_s29 }
  0x76   : > { %1896 = vrot.lane.b32.xlu0 %v3470_v2, %s3381_s10  ;;  %1898 = vrot.lane.b32.xlu1 %v3476_v4, %s3381_s10 }
  0x7a   : > { %1894 = vrot.lane.b32.xlu0 %v3472_v3, %s3381_s10  ;;  %1890 = vrot.lane.b32.xlu1 %v3478_v5, %s3381_s10 }
  0x7e   : > { %1892 = vrot.lane.b32.xlu0 %v3482_v6, %s3381_s10  ;;  %1888 = vrot.lane.b32.xlu1 %v3484_v7, %s3381_s10 }
  0x82   : > { %2106 = vrot.lane.b32.xlu1 %v2097_v13, %s3377_s26  ;;  %2079 = vperm.xlu0 %3327, %v2075_v16   ;;  %v2076_v16 = vld [vmem:[%s3816_s5 + $0x8] sm:$0xff] }
  0x86   : > { %2108 = vrot.lane.b32.xlu1 %v2101_v17, %s3377_s26  ;;  %2110 = vrot.lane.b32.xlu0 %v2105_v18, %s3377_s26  ;;  %v3119_v18 = vld [vmem:[%s3815_s4 + $0x50] sm:$0xff] }
  0x94   : > { %v414_v19 = vpop.permute.xlu0 %413  ;;  %v412_v20 = vpop.permute.xlu1 %411 }
  0x95   : > { %v420_v24 = vsel %vm417_vm1, %v412_v20, %v414_v19 }
  0x98   : > { %v416_v21 = vpop.permute.xlu0 %415  ;;  %v408_v22 = vpop.permute.xlu1 %407 }
  0x99   : > { %3206 = vmatprep.subr.mxu1 %v416_v21  ;;  %v421_v23 = vsel %vm417_vm1, %v414_v19, %v416_v21 }
  0x9a   : > { %463 = vmatprep.subr.mxu0 %v421_v23  ;;  %3207 = vmatpush3.msra.mxu1 %v416_v21 }
  0x9b   : > { %464 = vmatpush1.msra.mxu0 %v420_v24  ;;  %v3120_v24 = vld [vmem:[%s3815_s4 + $0x58] sm:$0xff] }
  0x9c   : > { %v410_v25 = vpop.permute.xlu0 %409  ;;  %v406_v26 = vpop.permute.xlu1 %405 }
  0x9d   : > { %3208 = vmatprep.subr.mxu1 %v410_v25  ;;  %v419_v27 = vsel %vm417_vm1, %v408_v22, %v410_v25  ;;  %v418_v28 = vsel %vm417_vm1, %v406_v26, %v408_v22 }
  0x9e   : > { %465 = vmatprep.subr.mxu0 %v419_v27  ;;  %3209 = vmatpush3.msra.mxu1 %v410_v25 }
  0x9f   : > { %466 = vmatpush1.msra.mxu0 %v418_v28  ;;  %621 = vmatprep.subr.mxu1 %v3470_v2 }
  0xa0   : > { %3211 = vmatmul.mubr.msk.f32.vlgmr.msra.gmra.mxu1 %vm428_vm0, %v3092_v29  ;;  %v757_v30 = vpop.permute.xlu0 %756  ;;  %3093 = vmatmul.mubr.msk.f32.vlgmr.msra.gmra.mxu0 %vm428_vm0, %v3461_v0  ;;  %v759_v31 = vpop.permute.xlu1 %758 }
  0xa1   : > { %622 = vmatpush1.msra.mxu1 %v3472_v3  ;;  %3213 = vmatprep.subr.mxu0 %v3476_v4  ;;  %v764_v38 = vsel %vm760_vm2, %v757_v30, %v759_v31 }
  0xa2   : > { %623 = vmatprep.subr.mxu1 %v3478_v5  ;;  %3214 = vmatpush3.msra.mxu0 %v3476_v4 }
  0xa3   : > { %624 = vmatpush1.msra.mxu1 %v3484_v7  ;;  %3215 = vmatprep.subr.mxu0 %v3482_v6  ;;  %v3113_v7 = vld [vmem:[%s3815_s4 + $0x40] sm:$0xff] }
  0xa4   : > { %505 = vmatprep.mubr.f32.mxu0 %v3373_v1  ;;  %657 = vmatprep.mubr.f32.mxu1 %v3373_v1  ;;  %v755_v35 = vpop.permute.xlu0 %754  ;;  %v751_v36 = vpop.permute.xlu1 %750 }
  0xa5   : > { %3216 = vmatpush3.msra.mxu0 %v3482_v6  ;;  %3220 = vmatprep.subr.mxu1 %v759_v31  ;;  %v763_v47 = vsel %vm760_vm2, %v755_v35, %v757_v30  ;;  %v3125_v30 = vld [vmem:[%s3815_s4 + $0x60] sm:$0xff] }
  0xa6   : > { %3094 = vmatmul.mubr.msk.f32.gmra.mxu0 %vm428_vm0, %v3092_v29  ;;  %805 = vmatprep.subr.mxu0 %v764_v38 }
  0xa7   : > { %3097 = vmatmul.mubr.msk.f32.vlgmr.msra.gmra.mxu1 %vm428_vm0, %v388_v37  ;;  %3217 = vmatprep.mubr.msk.f32.mxu0 %vm428_vm0, %v388_v37 }
  0xa8   : > { %3221 = vmatpush3.msra.mxu1 %v759_v31  ;;  %v753_v43 = vpop.permute.xlu0 %752  ;;  %v749_v44 = vpop.permute.xlu1 %748  ;;  %663 = vmatprep.mubr.f32.mxu1 %v3373_v1 }
  0xa9   : > { %3222 = vmatprep.subr.mxu1 %v753_v43  ;;  %v762_v45 = vsel %vm760_vm2, %v751_v36, %v753_v43  ;;  %v761_v48 = vsel %vm760_vm2, %v749_v44, %v751_v36 }
  0xaa   : > { %3218 = vmatmul.mubr.msk.f32.vlgmr.msra.gmra.mxu0 %vm428_vm0, %v389_v42  ;;  %3223 = vmatpush3.msra.mxu1 %v753_v43 }
  0xab   : > { %806 = vmatpush1.msra.mxu0 %v763_v47  ;;  %841 = vmatprep.mubr.f32.mxu0 %v3373_v1 }
  0xac   : > { %807 = vmatprep.subr.mxu0 %v762_v45  ;;  %v947_v51 = vpop.permute.xlu0 %946  ;;  %v949_v52 = vpop.permute.xlu1 %948  ;;  %3098 = vmatmul.mubr.msk.f32.gmra.mxu1 %vm428_vm0, %v389_v42  ;;  %v3131_v45 = vld [vmem:[%s3815_s4 + $0x70] sm:$0xff] }
  0xad   : > { %808 = vmatpush1.msra.mxu0 %v761_v48  ;;  %v954_v53 = vsel %vm950_vm4, %v947_v51, %v949_v52  ;;  %3224 = vmatprep.mubr.msk.f32.mxu1 %vm428_vm0, %v3101_v50 }
  0xae   : > { %3227 = vmatprep.subr.mxu0 %v949_v52  ;;  %3103 = vmatmul.mubr.msk.f32.vlgmr.msra.gmra.mxu0 %vm428_vm0, %v3101_v50 }
  0xaf   : > { %995 = vmatprep.subr.mxu1 %v954_v53  ;;  %3228 = vmatpush3.msra.mxu0 %v949_v52 }
  0xb0   : > { %v945_v56 = vpop.permute.xlu0 %944  ;;  %v941_v57 = vpop.permute.xlu1 %940  ;;  %3225 = vmatmul.mubr.msk.f32.vlgmr.msra.gmra.mxu1 %vm428_vm0, %v3102_v54  ;;  %847 = vmatprep.mubr.f32.mxu0 %v3373_v1 }
  0xb1   : > { %v953_v58 = vsel %vm950_vm4, %v945_v56, %v947_v51  ;;  %1031 = vmatprep.mubr.f32.mxu1 %v3373_v1  ;;  %2146 = vadd.xlane.f32.xlu1 %v2145_v55  ;;  %v3132_v51 = vld [vmem:[%s3815_s4 + $0x78] sm:$0xff] }
  0xb2   : > { %996 = vmatpush1.msra.mxu1 %v953_v58  ;;  %3104 = vmatmul.mubr.msk.f32.gmra.mxu0 %vm428_vm0, %v3102_v54 }
  0xb3   : > { %3231 = vmatprep.mubr.msk.f32.mxu0 %vm428_vm0, %v3107_v59 }
  0xb4   : > { %v943_v60 = vpop.permute.xlu0 %942  ;;  %v939_v61 = vpop.permute.xlu1 %938 }
  0xb5   : > { %v951_v63 = vsel %vm950_vm4, %v939_v61, %v941_v57  ;;  %3229 = vmatprep.subr.mxu0 %v943_v60  ;;  %v952_v0 = vsel %vm950_vm4, %v941_v57, %v943_v60  ;;  %v3137_v57 = vld [vmem:[%s3815_s4 + $0x80] sm:$0xff] }
  0xb6   : > { %997 = vmatprep.subr.mxu1 %v952_v0  ;;  %3230 = vmatpush3.msra.mxu0 %v943_v60 }
  0xb7   : > { %998 = vmatpush1.msra.mxu1 %v951_v63  ;;  %3232 = vmatmul.mubr.msk.f32.vlgmr.msra.gmra.mxu0 %vm428_vm0, %v3108_v62  ;;  %v3138_v63 = vld [vmem:[%s3815_s4 + $0x88] sm:$0xff] }
  0xb8   : > { %v1137_v2 = vpop.permute.xlu0 %1136  ;;  %v1139_v3 = vpop.permute.xlu1 %1138  ;;  %3109 = vmatmul.mubr.msk.f32.vlgmr.msra.gmra.mxu1 %vm428_vm0, %v3107_v59  ;;  %1221 = vmatprep.mubr.f32.mxu0 %v3373_v1 }
  0xb9   : > { %3234 = vmatprep.subr.mxu1 %v1139_v3  ;;  %v1144_v4 = vsel %vm1140_vm5, %v1137_v2, %v1139_v3  ;;  %1037 = vmatprep.mubr.f32.mxu1 %v3373_v1 }
  0xba   : > { %1185 = vmatprep.subr.mxu0 %v1144_v4  ;;  %3235 = vmatpush3.msra.mxu1 %v1139_v3 }
  0xbc   : > { %v1135_v5 = vpop.permute.xlu0 %1134  ;;  %v1131_v6 = vpop.permute.xlu1 %1130  ;;  %3110 = vmatmul.mubr.msk.f32.gmra.mxu1 %vm428_vm0, %v3108_v62 }
  0xbd   : > { %v1143_v8 = vsel %vm1140_vm5, %v1135_v5, %v1137_v2  ;;  %3238 = vmatprep.mubr.msk.f32.mxu1 %vm428_vm0, %v3113_v7 }
  0xbe   : > { %1186 = vmatpush1.msra.mxu0 %v1143_v8 }
  0xc0   : > { %v1133_v9 = vpop.permute.xlu0 %1132  ;;  %v1129_v10 = vpop.permute.xlu1 %1128 }
  0xc1   : > { %v1141_v12 = vsel %vm1140_vm5, %v1129_v10, %v1131_v6  ;;  %3236 = vmatprep.subr.mxu1 %v1133_v9  ;;  %v1142_v13 = vsel %vm1140_vm5, %v1131_v6, %v1133_v9 }
  0xc2   : > { %1187 = vmatprep.subr.mxu0 %v1142_v13  ;;  %3237 = vmatpush3.msra.mxu1 %v1133_v9 }
  0xc3   : > { %1188 = vmatpush1.msra.mxu0 %v1141_v12  ;;  %3239 = vmatmul.mubr.msk.f32.vlgmr.msra.gmra.mxu1 %vm428_vm0, %v3114_v11 }
  0xc4   : > { %v1327_v14 = vpop.permute.xlu0 %1326  ;;  %v1329_v15 = vpop.permute.xlu1 %1328  ;;  %3115 = vmatmul.mubr.msk.f32.vlgmr.msra.gmra.mxu0 %vm428_vm0, %v3113_v7  ;;  %1411 = vmatprep.mubr.f32.mxu1 %v3373_v1 }
  0xc5   : > { %3241 = vmatprep.subr.mxu0 %v1329_v15  ;;  %v1334_v17 = vsel %vm1330_vm6, %v1327_v14, %v1329_v15  ;;  %1227 = vmatprep.mubr.f32.mxu0 %v3373_v1 }
  0xc6   : > { %1375 = vmatprep.subr.mxu1 %v1334_v17  ;;  %3242 = vmatpush3.msra.mxu0 %v1329_v15 }
  0xc7   : > { %2084 = vperm.xlu1 %3328, %v2076_v16  }
  0xc8   : > { %v1325_v19 = vpop.permute.xlu0 %1324  ;;  %v1321_v20 = vpop.permute.xlu1 %1320  ;;  %3116 = vmatmul.mubr.msk.f32.gmra.mxu0 %vm428_vm0, %v3114_v11 }
  0xc9   : > { %v1333_v21 = vsel %vm1330_vm6, %v1325_v19, %v1327_v14  ;;  %3245 = vmatprep.mubr.msk.f32.mxu0 %vm428_vm0, %v3119_v18 }
  0xca   : > { %1376 = vmatpush1.msra.mxu1 %v1333_v21 }
  0xcc   : > { %v1323_v22 = vpop.permute.xlu0 %1322  ;;  %v1319_v23 = vpop.permute.xlu1 %1318 }
  0xcd   : > { %v1331_v25 = vsel %vm1330_vm6, %v1319_v23, %v1321_v20  ;;  %3243 = vmatprep.subr.mxu0 %v1323_v22  ;;  %v1332_v26 = vsel %vm1330_vm6, %v1321_v20, %v1323_v22 }
  0xce   : > { %1377 = vmatprep.subr.mxu1 %v1332_v26  ;;  %3244 = vmatpush3.msra.mxu0 %v1323_v22 }
  0xcf   : > { %1378 = vmatpush1.msra.mxu1 %v1331_v25  ;;  %3246 = vmatmul.mubr.msk.f32.vlgmr.msra.gmra.mxu0 %vm428_vm0, %v3120_v24 }
  0xd0   : > { %v1517_v27 = vpop.permute.xlu0 %1516  ;;  %v1519_v28 = vpop.permute.xlu1 %1518  ;;  %3121 = vmatmul.mubr.msk.f32.vlgmr.msra.gmra.mxu1 %vm428_vm0, %v3119_v18  ;;  %1601 = vmatprep.mubr.f32.mxu0 %v3373_v1 }
  0xd1   : > { %3248 = vmatprep.subr.mxu1 %v1519_v28  ;;  %v1524_v29 = vsel %vm1520_vm7, %v1517_v27, %v1519_v28  ;;  %1417 = vmatprep.mubr.f32.mxu1 %v3373_v1 }
  0xd2   : > { %1565 = vmatprep.subr.mxu0 %v1524_v29  ;;  %3249 = vmatpush3.msra.mxu1 %v1519_v28 }
  0xd4   : > { %v1515_v31 = vpop.permute.xlu0 %1514  ;;  %v1511_v35 = vpop.permute.xlu1 %1510  ;;  %3122 = vmatmul.mubr.msk.f32.gmra.mxu1 %vm428_vm0, %v3120_v24 }
  0xd5   : > { %v1523_v36 = vsel %vm1520_vm7, %v1515_v31, %v1517_v27  ;;  %3252 = vmatprep.mubr.msk.f32.mxu1 %vm428_vm0, %v3125_v30 }
  0xd6   : > { %1566 = vmatpush1.msra.mxu0 %v1523_v36 }
  0xd8   : > { %v1513_v37 = vpop.permute.xlu0 %1512  ;;  %v1509_v38 = vpop.permute.xlu1 %1508 }
  0xd9   : > { %v1521_v40 = vsel %vm1520_vm7, %v1509_v38, %v1511_v35  ;;  %3250 = vmatprep.subr.mxu1 %v1513_v37  ;;  %v1522_v41 = vsel %vm1520_vm7, %v1511_v35, %v1513_v37 }
  0xda   : > { %1567 = vmatprep.subr.mxu0 %v1522_v41  ;;  %3251 = vmatpush3.msra.mxu1 %v1513_v37 }
  0xdb   : > { %1568 = vmatpush1.msra.mxu0 %v1521_v40  ;;  %3253 = vmatmul.mubr.msk.f32.vlgmr.msra.gmra.mxu1 %vm428_vm0, %v3126_v39 }
  0xdc   : > { %v1707_v42 = vpop.permute.xlu0 %1706  ;;  %3127 = vmatmul.mubr.msk.f32.vlgmr.msra.gmra.mxu0 %vm428_vm0, %v3125_v30  ;;  %v1709_v43 = vpop.permute.xlu1 %1708  ;;  %1791 = vmatprep.mubr.f32.mxu1 %v3373_v1 }
  0xdd   : > { %3255 = vmatprep.subr.mxu0 %v1709_v43  ;;  %v1714_v44 = vsel %vm1710_vm8, %v1707_v42, %v1709_v43  ;;  %1607 = vmatprep.mubr.f32.mxu0 %v3373_v1 }
  0xde   : > { %1755 = vmatprep.subr.mxu1 %v1714_v44  ;;  %3256 = vmatpush3.msra.mxu0 %v1709_v43 }
  0xe0   : > { %v1705_v46 = vpop.permute.xlu0 %1704  ;;  %3128 = vmatmul.mubr.msk.f32.gmra.mxu0 %vm428_vm0, %v3126_v39  ;;  %v1701_v47 = vpop.permute.xlu1 %1700 }
  0xe1   : > { %v1713_v48 = vsel %vm1710_vm8, %v1705_v46, %v1707_v42  ;;  %3259 = vmatprep.mubr.msk.f32.mxu0 %vm428_vm0, %v3131_v45 }
  0xe2   : > { %1756 = vmatpush1.msra.mxu1 %v1713_v48 }
  0xe4   : > { %v1703_v49 = vpop.permute.xlu0 %1702  ;;  %v1699_v50 = vpop.permute.xlu1 %1698 }
  0xe5   : > { %v1711_v52 = vsel %vm1710_vm8, %v1699_v50, %v1701_v47  ;;  %3257 = vmatprep.subr.mxu0 %v1703_v49  ;;  %v1712_v53 = vsel %vm1710_vm8, %v1701_v47, %v1703_v49 }
  0xe6   : > { %1757 = vmatprep.subr.mxu1 %v1712_v53  ;;  %3258 = vmatpush3.msra.mxu0 %v1703_v49 }
  0xe7   : > { %1758 = vmatpush1.msra.mxu1 %v1711_v52  ;;  %3260 = vmatmul.mubr.msk.f32.vlgmr.msra.gmra.mxu0 %vm428_vm0, %v3132_v51 }
  0xe8   : > { %v1897_v54 = vpop.permute.xlu0 %1896  ;;  %v1899_v55 = vpop.permute.xlu1 %1898  ;;  %3133 = vmatmul.mubr.msk.f32.vlgmr.msra.gmra.mxu1 %vm428_vm0, %v3131_v45  ;;  %1981 = vmatprep.mubr.f32.mxu0 %v3373_v1 }
  0xe9   : > { %3262 = vmatprep.subr.mxu1 %v1899_v55  ;;  %v1904_v56 = vsel %vm1900_vm9, %v1897_v54, %v1899_v55  ;;  %1797 = vmatprep.mubr.f32.mxu1 %v3373_v1 }
  0xea   : > { %1945 = vmatprep.subr.mxu0 %v1904_v56  ;;  %3263 = vmatpush3.msra.mxu1 %v1899_v55 }
  0xec   : > { %v1895_v58 = vpop.permute.xlu0 %1894  ;;  %v1891_v59 = vpop.permute.xlu1 %1890  ;;  %3134 = vmatmul.mubr.msk.f32.gmra.mxu1 %vm428_vm0, %v3132_v51 }
  0xed   : > { %v1903_v60 = vsel %vm1900_vm9, %v1895_v58, %v1897_v54  ;;  %3266 = vmatprep.mubr.msk.f32.mxu1 %vm428_vm0, %v3137_v57 }
  0xee   : > { %1946 = vmatpush1.msra.mxu0 %v1903_v60 }
  0xf0   : > { %v1893_v61 = vpop.permute.xlu0 %1892  ;;  %v1889_v62 = vpop.permute.xlu1 %1888 }
  0xf1   : > { %v1901_v0 = vsel %vm1900_vm9, %v1889_v62, %v1891_v59  ;;  %3264 = vmatprep.subr.mxu1 %v1893_v61  ;;  %v1902_v2 = vsel %vm1900_vm9, %v1891_v59, %v1893_v61 }
  0xf2   : > { %1947 = vmatprep.subr.mxu0 %v1902_v2  ;;  %3265 = vmatpush3.msra.mxu1 %v1893_v61 }
  0xf3   : > { %1948 = vmatpush1.msra.mxu0 %v1901_v0  ;;  %3267 = vmatmul.mubr.msk.f32.vlgmr.msra.gmra.mxu1 %vm428_vm0, %v3138_v63 }
  0xf4   : > { %3139 = vmatmul.mubr.msk.f32.vlgmr.msra.gmra.mxu0 %vm428_vm0, %v3137_v57  ;;  %3269 = vmatprep.subr.mxu0 %v3373_v1 }
  0xf5   : > { %1987 = vmatprep.mubr.f32.mxu0 %v3373_v1 }
  0xf8   : > { %3140 = vmatmul.mubr.msk.f32.gmra.mxu0 %vm428_vm0, %v3138_v63 }
  0xf9   : > { %3271 = vmatprep.mubr.msk.f32.mxu0 %vm3383_vm10, %v3373_v1 }
 0x160   : > { %v501_v3 = vpop.f32.mrf.mxu0  ;;  %v3212_v4 = vpop.f32.mrf.mxu1 }
 0x162   : > { %v503_v5 = vpop.f32.mrf.mxu0  ;;  %v578_v6 = vpop.f32.mrf.mxu1 }
 0x166   : > { %v507_v7 = vpop.f32.mrf.mxu0 }
 0x167   : > { %v659_v8 = vpop.f32.mrf.mxu1 }
 0x168   : > { %v509_v9 = vpop.f32.mrf.mxu0  ;;  %v660_v62 = vadd.f32 %v659_v8, %v501_v3 }
 0x169   : > { %v661_v10 = vpop.f32.mrf.mxu1 }
 0x16a   : > { %v3219_v11 = vpop.f32.mrf.mxu0 }
 0x16b   : > { %v742_v12 = vadd.f32 %v3219_v11, %v3212_v4  ;;  %v662_v4 = vadd.f32 %v661_v10, %v503_v5 }
 0x16c   : > { %v665_v13 = vpop.f32.mrf.mxu1  ;;  %v736_v14 = vpop.f32.mrf.mxu0 }
 0x16d   : > { %v666_v15 = vadd.f32 %v665_v13, %v507_v7  ;;  %v737_v0 = vadd.f32 %v736_v14, %v578_v6 }
 0x16e   : > { %v667_v16 = vpop.f32.mrf.mxu1  ;;  %v843_v17 = vpop.f32.mrf.mxu0 }
 0x16f   : > { %v668_v18 = vadd.f32 %v667_v16, %v509_v9  ;;  %v929_v9 = vadd.f32 %v843_v17, %v660_v62 }
 0x170   : > { %v845_v19 = vpop.f32.mrf.mxu0  ;;  %v3226_v20 = vpop.f32.mrf.mxu1 }
 0x171   : > { %v934_v21 = vadd.f32 %v3226_v20, %v742_v12  ;;  %v930_v13 = vadd.f32 %v845_v19, %v662_v4  ;;  %v2107_v20 = vpop.permute.xlu1 %2106 }
 0x172   : > { %v849_v22 = vpop.f32.mrf.mxu0  ;;  %v920_v24 = vpop.f32.mrf.mxu1 }
 0x173   : > { %v932_v23 = vadd.f32 %v849_v22, %v666_v15  ;;  %v931_v11 = vadd.f32 %v920_v24, %v737_v0 }
 0x174   : > { %v851_v25 = vpop.f32.mrf.mxu0 }
 0x175   : > { %v933_v26 = vadd.f32 %v851_v25, %v668_v18  ;;  %v2109_v6 = vpop.permute.xlu1 %2108 }
 0x177   : > { %v3233_v27 = vpop.f32.mrf.mxu0 }
 0x178   : > { %v1033_v28 = vpop.f32.mrf.mxu1  ;;  %v1124_v29 = vadd.f32 %v3233_v27, %v934_v21 }
 0x179   : > { %v1110_v38 = vpop.f32.mrf.mxu0  ;;  %v1119_v21 = vadd.f32 %v1033_v28, %v929_v9 }
 0x17a   : > { %v1035_v30 = vpop.f32.mrf.mxu1  ;;  %v1121_v22 = vadd.f32 %v1110_v38, %v931_v11 }
 0x17b   : > { %v1120_v25 = vadd.f32 %v1035_v30, %v930_v13  ;;  %v2147_v30 = vpop.xlane.xlu1 %2146 }
 0x17c   : > { %v1039_v31 = vpop.f32.mrf.mxu1 }
 0x17d   : > { %v1122_v35 = vadd.f32 %v1039_v31, %v932_v23 }
 0x17e   : > { %v1041_v36 = vpop.f32.mrf.mxu1 }
 0x17f   : > { %v1123_v37 = vadd.f32 %v1041_v36, %v933_v26 }
 0x183   : > { %v3240_v39 = vpop.f32.mrf.mxu1 }
 0x184   : > { %v1223_v40 = vpop.f32.mrf.mxu0  ;;  %v1314_v41 = vadd.f32 %v3240_v39, %v1124_v29 }
 0x185   : > { %v1300_v47 = vpop.f32.mrf.mxu1  ;;  %v1309_v27 = vadd.f32 %v1223_v40, %v1119_v21 }
 0x186   : > { %v1225_v42 = vpop.f32.mrf.mxu0  ;;  %v1311_v8 = vadd.f32 %v1300_v47, %v1121_v22 }
 0x187   : > { %v1310_v5 = vadd.f32 %v1225_v42, %v1120_v25 }
 0x188   : > { %v1229_v43 = vpop.f32.mrf.mxu0 }
 0x189   : > { %v1312_v44 = vadd.f32 %v1229_v43, %v1122_v35  ;;  %v2080_v35 = vpop.permute.xlu0 %2079 }
 0x18a   : > { %v1231_v45 = vpop.f32.mrf.mxu0 }
 0x18b   : > { %v1313_v46 = vadd.f32 %v1231_v45, %v1123_v37 }
 0x18f   : > { %v3247_v48 = vpop.f32.mrf.mxu0 }
 0x190   : > { %v1504_v49 = vadd.f32 %v3247_v48, %v1314_v41  ;;  %v1413_v50 = vpop.f32.mrf.mxu1 }
 0x191   : > { %v1490_v56 = vpop.f32.mrf.mxu0  ;;  %v1499_v10 = vadd.f32 %v1413_v50, %v1309_v27  ;;  %v2112_v50 = vsel %vm1140_vm5, %v2107_v20, %v2109_v6 }
 0x192   : > { %v1415_v51 = vpop.f32.mrf.mxu1  ;;  %v1501_v24 = vadd.f32 %v1490_v56, %v1311_v8 }
 0x193   : > { %v1500_v29 = vadd.f32 %v1415_v51, %v1310_v5 }
 0x194   : > { %v1419_v52 = vpop.f32.mrf.mxu1 }
 0x195   : > { %v1502_v53 = vadd.f32 %v1419_v52, %v1312_v44 }
 0x196   : > { %v1421_v54 = vpop.f32.mrf.mxu1 }
 0x197   : > { %v1503_v55 = vadd.f32 %v1421_v54, %v1313_v46 }
 0x19b   : > { %v3254_v57 = vpop.f32.mrf.mxu1 }
 0x19c   : > { %v1694_v58 = vadd.f32 %v3254_v57, %v1504_v49  ;;  %v1603_v59 = vpop.f32.mrf.mxu0  ;;  %v3713_v49 = vpop.permute.xlu0 %2110 }
 0x19d   : > { %v1680_v12 = vpop.f32.mrf.mxu1  ;;  %v1689_v19 = vadd.f32 %v1603_v59, %v1499_v10  ;;  %v2113_v52 = vsel %vm1140_vm5, %v2109_v6, %v3713_v49  ;;  %v3718_v57 = vpop.permute.xlu1 %2084 }
 0x19e   : > { %v1605_v60 = vpop.f32.mrf.mxu0  ;;  %v1691_v36 = vadd.f32 %v1680_v12, %v1501_v24  ;;  %v2466_v24 = vld [vmem:[%s3553_s20 + $0x20] sm:$0xff] }
 0x19f   : > { %v1690_v37 = vadd.f32 %v1605_v60, %v1500_v29  ;;  %v2148_v60 = vmax.f32 %v2147_v30, 1e-24  ;;  %v2467_v29 = vld [vmem:[%s3553_s20 + $0x28] sm:$0xff] }
 0x1a0   : > { %v1609_v61 = vpop.f32.mrf.mxu0 }
 0x1a1   : > { %v1692_v63 = vadd.f32 %v1609_v61, %v1502_v53  ;;  %3329 = vrsqrt.f32 %v2148_v60 }
 0x1a2   : > { %v1611_v2 = vpop.f32.mrf.mxu0 }
 0x1a3   : > { %v1693_v7 = vadd.f32 %v1611_v2, %v1503_v55 }
 0x1a7   : > { %v3261_v15 = vpop.f32.mrf.mxu0 }
 0x1a8   : > { %v1884_v16 = vadd.f32 %v3261_v15, %v1694_v58  ;;  %v1793_v18 = vpop.f32.mrf.mxu1 }
 0x1a9   : > { %v1870_v31 = vpop.f32.mrf.mxu0  ;;  %v1879_v28 = vadd.f32 %v1793_v18, %v1689_v19 }
 0x1aa   : > { %v1795_v23 = vpop.f32.mrf.mxu1  ;;  %v1881_v39 = vadd.f32 %v1870_v31, %v1691_v36  ;;  %v2482_v31 = vmul.f32 %v2466_v24, %v2466_v24 }
 0x1ab   : > { %v1880_v43 = vadd.f32 %v1795_v23, %v1690_v37 }
 0x1ac   : > { %v1799_v26 = vpop.f32.mrf.mxu1 }
 0x1ad   : > { %v1882_v3 = vadd.f32 %v1799_v26, %v1692_v63 }
 0x1ae   : > { %v1801_v14 = vpop.f32.mrf.mxu1 }
 0x1af   : > { %v1883_v17 = vadd.f32 %v1801_v14, %v1693_v7 }
 0x1b3   : > { %v3268_v38 = vpop.f32.mrf.mxu1 }
 0x1b4   : > { %v3711_v41 = vadd.f32 %v3268_v38, %v1884_v16  ;;  %v1983_v40 = vpop.f32.mrf.mxu0  ;;  %v3330_v16 = vpop.eup %3329 }
 0x1b5   : > { %v2069_v44 = vadd.f32 %v1983_v40, %v1879_v28  ;;  %v2060_v45 = vpop.f32.mrf.mxu1  ;;  %v2154_v18 = vmul.f32 %v3330_v16, %v3566_v33  ;;  %v2153_v20 = vmul.f32 %v3330_v16, %v3563_v32  ;;  %v2155_v21 = vmul.f32 %v3330_v16, %v3571_v34 }
 0x1b6   : > { %v2071_v42 = vadd.f32 %v2060_v45, %v1881_v39  ;;  %v1985_v46 = vpop.f32.mrf.mxu0  ;;  %v2092_v40 = vadd.f32 %v3718_v57, %v3711_v41 }
 0x1b7   : > { %v2087_v47 = vadd.f32 %v2080_v35, %v2069_v44  ;;  %v2070_v48 = vadd.f32 %v1985_v46, %v1880_v43  ;;  %2192 = vmatprep.subr.mxu1 %v2154_v18  ;;  %3270 = vmatpush3.xpose.msk.msra.mxu0 %vm2133_vm3, %v2155_v21 }
 0x1b8   : > { %v2089_v51 = vadd.f32 %v2080_v35, %v2071_v42  ;;  %v1989_v53 = vpop.f32.mrf.mxu0  ;;  %2193 = vmatpush1.xpose.msra.mxu1 %v2153_v20  ;;  %3274 = vmatprep.subr.mxu0 %v3373_v1  ;;  %v2122_v43 = vmul.f32 %v3713_v49, %v2092_v40  ;;  %v2644_v20 = vstv %s3149_s22 }
 0x1b9   : > { %v2117_v54 = vmul.f32 %v2112_v50, %v2087_v47  ;;  %v2088_v55 = vadd.f32 %v2080_v35, %v2070_v48  ;;  %v2072_v56 = vadd.f32 %v1989_v53, %v1882_v3  ;;  %v2303_v3 = vstv %s2302_s18 }
 0x1ba   : > { %v2119_v58 = vmul.f32 %v3713_v49, %v2089_v51  ;;  %v1991_v59 = vpop.f32.mrf.mxu0  ;;  %v2483_v35 = vmul.f32 %v2467_v29, %v2467_v29  ;;  %v2473_v42 = vmul.f32 %v2122_v43, %v2122_v43  ;;  %v2127_v49 = vld [vmem:[%s3757_s21 + $0x8] sm:$0xff] }
 0x1bb   : > { %v2118_v61 = vmul.f32 %v2113_v52, %v2088_v55  ;;  %v2090_v62 = vadd.f32 %v3718_v57, %v2072_v56  ;;  %v2073_v63 = vadd.f32 %v1991_v59, %v1883_v17  ;;  %v2129_v7 = vmul.f32 %v2117_v54, %v2117_v54  ;;  %v2465_v17 = vld [vmem:[%s3553_s20 + $0x18] sm:$0xff]  ;;  %v2128_v55 = vld [vmem:[%s3757_s21 + $0x10] sm:$0xff]  ;;  %2351 = vmatprep.subr.mxu1 %v2127_v49 }
 0x1bc   : > { %v2131_v0 = vmul.f32 %v2119_v58, %v2119_v58  ;;  %v2481_v19 = vmul.f32 %v2465_v17, %v2465_v17  ;;  %v2485_v37 = vsel %vm2133_vm3, %v2483_v35, 0.0 }
 0x1bd   : > { %v3722_v2 = vmul.f32 %v2112_v50, %v2090_v62  ;;  %v2091_v4 = vadd.f32 %v3718_v57, %v2073_v63  ;;  %v2130_v9 = vmul.f32 %v2118_v61, %v2118_v61  ;;  %v2475_v50 = vsel %vm2133_vm3, %v2473_v42, 0.0 }
 0x1be   : > { %v2134_v13 = vsel %vm2133_vm3, %v2131_v0, 0.0  ;;  %v2484_v36 = vadd.f32 %v2482_v31, %v2481_v19 }
 0x1bf   : > { %v3725_v11 = vmul.f32 %v2113_v52, %v2091_v4  ;;  %v2132_v12 = vadd.f32 %v2130_v9, %v2129_v7  ;;  %v2471_v45 = vmul.f32 %v3722_v2, %v3722_v2 }
 0x1c0   : > { %v2486_v28 = vadd.f32 %v2485_v37, %v2484_v36 }
 0x1c1   : > { %v2135_v15 = vadd.f32 %v2134_v13, %v2132_v12  ;;  %v2472_v44 = vmul.f32 %v3725_v11, %v3725_v11 }
 0x1c3   : > { %2136 = vadd.xlane.f32.xlu0 %v2135_v15  ;;  %v2474_v47 = vadd.f32 %v2472_v44, %v2471_v45 }
 0x1c5   : > { %v2476_v52 = vadd.f32 %v2475_v50, %v2474_v47 }
 0x24c   : > { %v2137_v22 = vpop.xlane.xlu0 %2136 }
 0x24d   : > { %v2138_v23 = vmax.f32 %v2137_v22, 1e-24 }
 0x24f   : > { %3331 = vrsqrt.f32 %v2138_v23 }
 0x25c   : > { %v3332_v25 = vpop.eup %3331 }
 0x25d   : > { %v2151_v26 = vmul.f32 %v3332_v25, %v2118_v61  ;;  %v2152_v33 = vmul.f32 %v3332_v25, %v2119_v58  ;;  %v2150_v27 = vmul.f32 %v3332_v25, %v2117_v54  ;;  %v2126_v54 = vld [vmem:[%s3757_s21] sm:$0xff] }
 0x25f   : > { %2226 = vmatprep.mubr.f32.mxu1 %v2151_v26  ;;  %3272 = vmatmul.mubr.msk.f32.vlgmr.msra.gmra.mxu0 %vm2133_vm3, %v2152_v33  ;;  %v2813_v26 = vld [vmem:[%s3819_s8] sm:$0xff]  ;;  %v2814_v33 = vld [vmem:[%s3819_s8 + $0x8] sm:$0xff] }
 0x260   : > { %2227 = vmatmul.mubr.f32.vlgmr.msra.gmra.mxu1 %v2150_v27  ;;  %3276 = vmatprep.mubr.msk.f32.mxu0 %vm3383_vm10, %v3373_v1 }
 0x261   : > { %2385 = vmatprep.mubr.f32.mxu1 %v3373_v1  ;;  %3275 = vmatpush3.msra.mxu0 %v2128_v55 }
 0x262   : > { %2352 = vmatpush1.msra.mxu1 %v2126_v54  ;;  %3279 = vmatprep.subr.mxu0 %v3373_v1 }
 0x31f   : > { %v2298_v32 = vpop.f32.mrf.mxu0 }
 0x320   : > { %v2228_v34 = vpop.f32.mrf.mxu1 }
 0x321   : > { %v2299_v8 = vadd.f32 %v2298_v32, %v2228_v34  ;;  %v3273_v6 = vpop.f32.mrf.mxu0 }
 0x322   : > { %v2230_v14 = vpop.f32.mrf.mxu1  ;;  %v2469_v6 = vld [vmem:[%s3757_s21 + $0x20] sm:$0xff] }
 0x323   : > { %v2304_v5 = vmul.f32 %v2303_v3, %v2299_v8  ;;  %v2468_v14 = vld [vmem:[%s3757_s21 + $0x18] sm:$0xff] }
 0x325   : > { %v2306_v10 = vsel %vm2305_vm11, %v2304_v5, -inf }
 0x326   : > { %2307 = vmax.xlane.f32.xlu0 %v2306_v10 }
 0x32a   : > { %2487 = vadd.xlane.f32.xlu0 %v2486_v28  ;;  %v2806_v28 = vld [vmem:[%s3818_s7 + $0x8] sm:$0xff] }
 0x3af   : > { %v2308_v38 = vpop.xlane.xlu0 %2307 }
 0x3b0   : > { %v2309_v39 = vsub.f32 %v2304_v5, %v2308_v38  ;;  %v2470_v5 = vld [vmem:[%s3757_s21 + $0x28] sm:$0xff] }
 0x3b2   : > { %v2310_v30 = vmul.f32 1.442695, %v2309_v39 }
 0x3b3   : > { %v2488_v51 = vpop.xlane.xlu0 %2487 }
 0x3b4   : > { %3333 = vpow2.f32 %v2310_v30  ;;  %v2489_v53 = vmax.f32 %v2488_v51, 1e-24 }
 0x3b6   : > { %3335 = vrsqrt.f32 %v2489_v53 }
 0x3c1   : > { %v3334_v46 = vpop.eup %3333 }
 0x3c2   : > { %v2312_v48 = vsel %vm2305_vm11, %v3334_v46, 0.0 }
 0x3c3   : > { %2313 = vadd.xlane.f32.xlu0 %v2312_v48  ;;  %v3336_v41 = vpop.eup %3335 }
 0x3c4   : > { %v2495_v56 = vmul.f32 %v3336_v41, %v2466_v24  ;;  %v2494_v62 = vmul.f32 %v3336_v41, %v2465_v17  ;;  %v2496_v63 = vmul.f32 %v3336_v41, %v2467_v29  ;;  %v2805_v29 = vld [vmem:[%s3818_s7] sm:$0xff] }
 0x3c6   : > { %2533 = vmatprep.subr.mxu1 %v2495_v56 }
 0x3c7   : > { %2477 = vadd.xlane.f32.xlu0 %v2476_v52 }
 0x44c   : > { %v2314_v57 = vpop.xlane.xlu0 %2313 }
 0x44d   : > { %3337 = vrcp.f32 %v2314_v57 }
 0x450   : > { %v2478_v58 = vpop.xlane.xlu0 %2477 }
 0x451   : > { %v2479_v59 = vmax.f32 %v2478_v58, 1e-24 }
 0x453   : > { %3339 = vrsqrt.f32 %v2479_v59 }
 0x45a   : > { %v3338_v60 = vpop.eup %3337 }
 0x45b   : > { %v2317_v61 = vmul.f32 %v3338_v60, %v3334_v46 }
 0x45d   : > { %3145 = vmatmul.mubr.msk.f32.vlgmr.msra.gmra.mxu1 %vm2305_vm11, %v2317_v61  ;;  %3277 = vmatmul.mubr.msk.f32.vlgmr.msra.gmra.mxu0 %vm2305_vm11, %v2317_v61 }
 0x45e   : > { %2534 = vmatpush1.xpose.msra.mxu1 %v2494_v62  ;;  %3280 = vmatpush3.xpose.msk.msra.mxu0 %vm2133_vm3, %v2496_v63 }
 0x45f   : > { %3281 = vmatprep.mubr.msk.f32.mxu0 %vm3383_vm10, %v3373_v1  ;;  %3284 = vmatprep.subr.mxu0 %v3373_v1 }
 0x460   : > { %v3340_v0 = vpop.eup %3339  ;;  %2691 = vmatprep.subr.mxu1 %v2469_v6 }
 0x461   : > { %v2492_v4 = vmul.f32 %v3340_v0, %v3725_v11  ;;  %v2493_v7 = vmul.f32 %v3340_v0, %v2122_v43  ;;  %v2491_v9 = vmul.f32 %v3340_v0, %v3722_v2 }
 0x463   : > { %2567 = vmatprep.mubr.f32.mxu1 %v2492_v4  ;;  %3282 = vmatmul.mubr.msk.f32.vlgmr.msra.gmra.mxu0 %vm2133_vm3, %v2493_v7 }
 0x464   : > { %2568 = vmatmul.mubr.f32.vlgmr.msra.gmra.mxu1 %v2491_v9  ;;  %3286 = vmatprep.mubr.msk.f32.mxu0 %vm3383_vm10, %v3373_v1 }
 0x465   : > { %2725 = vmatprep.mubr.f32.mxu1 %v3373_v1  ;;  %3285 = vmatpush3.msra.mxu0 %v2470_v5 }
 0x466   : > { %2692 = vmatpush1.msra.mxu1 %v2468_v14 }
 0x51d   : > { %v2387_v12 = vpop.f32.mrf.mxu1  ;;  %v2458_v13 = vpop.f32.mrf.mxu0 }
 0x51e   : > { %2464 = vst.msk [vmem:[#allocation2 + $0x10] sm:$0xff] %vm2133_vm3, %v2458_v13 }
 0x51f   : > { %v2389_v15 = vpop.f32.mrf.mxu1  ;;  %v3278_v16 = vpop.f32.mrf.mxu0 }
 0x523   : > { %v2639_v11 = vpop.f32.mrf.mxu0 }
 0x524   : > { %v2569_v18 = vpop.f32.mrf.mxu1 }
 0x525   : > { %v2640_v2 = vadd.f32 %v2639_v11, %v2569_v18  ;;  %v3283_v21 = vpop.f32.mrf.mxu0  ;;  %v2809_v38 = vld [vmem:[#allocation2 + $0x10] sm:$0xff] }
 0x526   : > { %v2571_v22 = vpop.f32.mrf.mxu1 }
 0x527   : > { %v2645_v23 = vmul.f32 %v2644_v20, %v2640_v2 }
 0x529   : > { %v2646_v25 = vsel %vm2305_vm11, %v2645_v23, -inf }
 0x52a   : > { %2647 = vmax.xlane.f32.xlu0 %v2646_v25 }
 0x540   : > { %2817 = vperm.xlu0 %3327, %v2813_v26  }
 0x544   : > { %2822 = vperm.xlu0 %3327, %v2814_v33  }
 0x5b3   : > { %v2648_v27 = vpop.xlane.xlu0 %2647 }
 0x5b4   : > { %v2649_v32 = vsub.f32 %v2645_v23, %v2648_v27 }
 0x5b6   : > { %v2650_v34 = vmul.f32 1.442695, %v2649_v32 }
 0x5b8   : > { %3341 = vpow2.f32 %v2650_v34 }
 0x5bb   : > { %v2818_v39 = vpop.permute.xlu0 %2817 }
 0x5c5   : > { %v3342_v3 = vpop.eup %3341 }
 0x5c6   : > { %v2652_v8 = vsel %vm2305_vm11, %v3342_v3, 0.0 }
 0x5c7   : > { %2653 = vadd.xlane.f32.xlu1 %v2652_v8 }
 0x650   : > { %v2654_v10 = vpop.xlane.xlu1 %2653 }
 0x651   : > { %3343 = vrcp.f32 %v2654_v10 }
 0x65e   : > { %v3344_v17 = vpop.eup %3343 }
 0x65f   : > { %v2657_v24 = vmul.f32 %v3344_v17, %v3342_v3 }
 0x661   : > { %3150 = vmatmul.mubr.msk.f32.vlgmr.msra.gmra.mxu1 %vm2305_vm11, %v2657_v24  ;;  %3287 = vmatmul.mubr.msk.f32.vlgmr.msra.gmra.mxu0 %vm2305_vm11, %v2657_v24 }
 0x662   : > { %2895 = vmatprep.mubr.f32.mxu1 %v3373_v1  ;;  %3293 = vmatprep.mubr.msk.f32.mxu0 %vm428_vm0, %v2805_v29 }
 0x721   : > { %v2727_v19 = vpop.f32.mrf.mxu1  ;;  %v2798_v31 = vpop.f32.mrf.mxu0 }
 0x722   : > { %2804 = vst.msk [vmem:[#allocation2 + $0x28] sm:$0xff] %vm2133_vm3, %v2798_v31 }
 0x723   : > { %v2729_v35 = vpop.f32.mrf.mxu1  ;;  %v3288_v36 = vpop.f32.mrf.mxu0 }
 0x724   : > { %2859 = vmatprep.subr.mxu1 %v2729_v35 }
 0x725   : > { %2860 = vmatpush1.msra.mxu1 %v2727_v19 }
 0x726   : > { %2861 = vmatprep.subr.mxu1 %v2389_v15 }
 0x727   : > { %2862 = vmatpush1.msra.mxu1 %v2387_v12 }
 0x728   : > { %3152 = vmatmul.mubr.msk.f32.vlgmr.msra.gmra.mxu1 %vm428_vm0, %v2805_v29 }
 0x729   : > { %v2812_v37 = vld [vmem:[#allocation2 + $0x28] sm:$0xff]  ;;  %2901 = vmatprep.mubr.f32.mxu1 %v3373_v1  ;;  %v2823_v1 = vpop.permute.xlu0 %2822 }
 0x72a   : > { %3289 = vmatprep.subr.mxu0 %v2812_v37 }
 0x72b   : > { %3290 = vmatpush3.msra.mxu0 %v2812_v37 }
 0x72c   : > { %3291 = vmatprep.subr.mxu0 %v2809_v38  ;;  %3153 = vmatmul.mubr.msk.f32.gmra.mxu1 %vm428_vm0, %v2806_v28 }
 0x72d   : > { %3292 = vmatpush3.msra.mxu0 %v2809_v38 }
 0x72e   : > { %3294 = vmatmul.mubr.msk.f32.vlgmr.msra.gmra.mxu0 %vm428_vm0, %v2806_v28 }
 0x7e8   : > { %v2897_v30 = vpop.f32.mrf.mxu1 }
 0x7e9   : > { %v2898_v40 = vadd.f32 %v2897_v30, %v2818_v39 }
 0x7ea   : > { %v2899_v43 = vpop.f32.mrf.mxu1 }
 0x7eb   : > { %2983 = vst [vmem:[%s386_s13] sm:$0xff] %v2898_v40  ;;  %v2900_v44 = vadd.f32 %v2899_v43, %v2818_v39 }
 0x7ec   : > { %v2903_v45 = vpop.f32.mrf.mxu1 }
 0x7ed   : > { %2984 = vst [vmem:[%s386_s13 + $0x8] sm:$0xff] %v2900_v44  ;;  %v2904_v42 = vadd.f32 %v2903_v45, %v2823_v1 }
 0x7ee   : > { %v3295_v46 = vpop.f32.mrf.mxu0  ;;  %v2905_v47 = vpop.f32.mrf.mxu1 }
 0x7ef   : > { %v2980_v48 = vadd.f32 %v3295_v46, %v2823_v1  ;;  %2986 = vst [vmem:[%s386_s13 + $0x18] sm:$0xff] %v2904_v42  ;;  %v2906_v50 = vadd.f32 %v2905_v47, %v2823_v1 }
 0x7f0   : > { %v2974_v51 = vpop.f32.mrf.mxu0 }
 0x7f1   : > { %2988 = vst.msk [vmem:[%s386_s13 + $0x28] sm:$0xff] %vm2133_vm3, %v2980_v48  ;;  %v2975_v52 = vadd.f32 %v2974_v51, %v2818_v39  ;;  %2987 = vst [vmem:[%s386_s13 + $0x20] sm:$0xff] %v2906_v50 }
 0x7f3   : > { %2985 = vst.msk [vmem:[%s386_s13 + $0x10] sm:$0xff] %vm2133_vm3, %v2975_v52 }
 0x7f4 PF: > { %s20_s30 = sadd.s32 1, %s3370_s30  }
 0x7f5   : > { %p17_p1 = scmp.ge.s32.totalorder %s20_s30, 4  }
 0x7f7   :  { %19 = sbr.rel (!%p17_p1) target bundleno = 1 (0x1), region = 105 }
 0x7fc   :  { %3010 = vsyncpa [#allocation4], 1 }
 0x7fd   :  { %3012 = vsyncpa [#allocation4 + $0x1], 1 }

</bundles_post_ra>
